<compile_context>
chip_gen: v6e
topology: v6e:2x2x1
jax: 0.10.0
libtpu: 0.0.40
codegen_flags: <defaults>
</compile_context>

<pallas_src>
import jax
import jax.numpy as jnp
from jax.experimental import pallas as pl
from jax.experimental.pallas import tpu as pltpu

SPARSITY = 0.01        # softshrink lambda
LEAKY_SLOPE = 0.01     # torch LeakyReLU default
LANES = 128            # lane-dense padded width for the fc/attention/head chain
HEAD_OUT = 5           # real head output width (head = Linear(80, 5))
FQ_TILE_MAX = 512      # Fq tile for kernel 1 at large sizes
VMEM_LIMIT = 32 * 1024 * 1024   # fits v5e/v6e/v7x scoped/physical budgets


def _softshrink(x, lam=SPARSITY):
    # x - clip(x, -lam, lam): 1 min + 1 max + 1 sub (vs ~2x for nested where)
    return x - jnp.clip(x, -lam, lam)


def _leaky_relu(x):
    return jnp.maximum(x, LEAKY_SLOPE * x)


# --------------------------------------------------------------------------
# Kernel 1: tokenEmb (fused in the frequency domain) + fourierGC + "+bias".
#   torch.einsum('bli,ii->bli', x, w) only reads diag(w) -> elementwise mults.
#   Grid: (B, Fq tiles), both axes "parallel" (independent elementwise work).
# --------------------------------------------------------------------------
def fourier_gc_kernel(xr_ref, xi_ref, emb_ref, wd_ref, bd_ref, zr_ref, zi_ref):
    emb = emb_ref[...]                       # (1, 1, E)
    E = emb.shape[-1]
    # tokenEmb fused: rfft is linear along the transform axis, hence
    # rfft(flat[:, :, None] * emb) == rfft(flat)[:, :, None] * emb.
    xr = xr_ref[...] * emb                   # (1, T, 1) -> (1, T, E) broadcast
    xi = xi_ref[...] * emb

    wd = wd_ref[...]                         # (6, E): diag(w1[0]), diag(w1[1]), ...
    bd = bd_ref[...]                         # (6, E): b1[0], b1[1], b2[0], ...

    def row(m, i):                           # (E,) -> (1, 1, E); implicit broadcast
        return m[i].reshape(1, 1, E)

    w1r, w1i, w2r, w2i, w3r, w3i = (row(wd, i) for i in range(6))
    b1r, b1i, b2r, b2i, b3r, b3i = (row(bd, i) for i in range(6))

    # layer 1
    o1r = jnp.maximum(xr * w1r - xi * w1i + b1r, 0.0)
    o1i = jnp.maximum(xi * w1r + xr * w1i + b1i, 0.0)
    y_r = _softshrink(o1r)
    y_i = _softshrink(o1i)

    # layer 2 (uses pre-shrink o1, as in torch)
    o2r = jnp.maximum(o1r * w2r - o1i * w2i + b2r, 0.0)
    o2i = jnp.maximum(o1i * w2r + o1r * w2i + b2i, 0.0)
    x2r = _softshrink(o2r) + y_r
    x2i = _softshrink(o2i) + y_i

    # layer 3 (uses pre-shrink o2) + fused "x = x + bias" residual from forward
    o3r = jnp.maximum(o2r * w3r - o2i * w3i + b3r, 0.0)
    o3i = jnp.maximum(o2i * w3r + o2r * w3i + b3i, 0.0)
    zr_ref[...] = _softshrink(o3r) + x2r + xr
    zi_ref[...] = _softshrink(o3i) + x2i + xi


def fourier_gc(xr, xi, emb, wd, bd):
    B, Fq, _ = xr.shape
    E = emb.shape[-1]
    # Full-Fq block when small (equals the array dim -> layout-legal even if
    # not a multiple of 8); 512-row tiles (multiple of 8) when large.
    fq_tile = Fq if Fq <= FQ_TILE_MAX else FQ_TILE_MAX
    grid = (B, pl.cdiv(Fq, fq_tile))

    x_spec = pl.BlockSpec((1, fq_tile, 1), lambda b, f: (b, f, 0))
    z_spec = pl.BlockSpec((1, fq_tile, E), lambda b, f: (b, f, 0))

    def const_spec(shape):
        return pl.BlockSpec(shape, lambda b, f: (0,) * len(shape))

    return pl.pallas_call(
        fourier_gc_kernel,
        out_shape=(jax.ShapeDtypeStruct((B, Fq, E), jnp.float32),
                   jax.ShapeDtypeStruct((B, Fq, E), jnp.float32)),
        grid=grid,
        in_specs=[x_spec, x_spec, const_spec(emb.shape),
                  const_spec(wd.shape), const_spec(bd.shape)],
        out_specs=(z_spec, z_spec),
        compiler_params=pltpu.CompilerParams(
            dimension_semantics=("parallel", "parallel"),
            vmem_limit_bytes=VMEM_LIMIT),
    )(xr, xi, emb, wd, bd)


# --------------------------------------------------------------------------
# Kernel 2 (fused, gridded over batch): folded fc1, fc2, fc3 (+LeakyReLU),
# tanh attention, softmax pooling over the N rows of this batch, head Linear.
# All matmul operands bf16 / f32 accumulate; all inner dims padded to 128.
# --------------------------------------------------------------------------
def fc_attn_head_kernel(y_ref, w1_ref, b1_ref, w2_ref, b2_ref, w3_ref, b3_ref,
                        wha_ref, bha_ref, wat_ref, whd_ref, bhd_ref, o_ref):
    bf16 = jnp.bfloat16
    y = y_ref[0]                                                   # (N, L*E) bf16
    h = _leaky_relu(jnp.dot(y, w1_ref[...],
                            preferred_element_type=jnp.float32) + b1_ref[...])
    h = _leaky_relu(jnp.dot(h.astype(bf16), w2_ref[...],
                            preferred_element_type=jnp.float32) + b2_ref[...])
    h = jnp.dot(h.astype(bf16), w3_ref[...],
                preferred_element_type=jnp.float32) + b3_ref[...]  # (N, 128)
    a = jnp.tanh(jnp.dot(h.astype(bf16), wha_ref[...],
                         preferred_element_type=jnp.float32) + bha_ref[...])

    # attention score: VPU multiply + XLU lane-reduce (no N=1 MXU matmul)
    s = jnp.sum(a * wat_ref[...], axis=-1, keepdims=True)          # (N, 1)
    s = s - jnp.max(s, axis=0, keepdims=True)
    e = jnp.exp(s)
    alpha = e * pl.reciprocal(jnp.sum(e, axis=0, keepdims=True), approx=True)
    p = jnp.sum(alpha * a, axis=0, keepdims=True)                  # (1, 128)

    out = jnp.dot(p.astype(bf16), whd_ref[...],
                  preferred_element_type=jnp.float32) + bhd_ref[...]
    o_ref[...] = out.reshape(1, 1, LANES)


def fc_attn_head(y3, prep):
    B, N, LE = y3.shape
    weights = (prep['w1_fold'], prep['fc1_b'], prep['fc2_w'], prep['fc2_b'],
               prep['fc3_w'], prep['fc3_b'], prep['wha_w'], prep['wha_b'],
               prep['wat_row'], prep['head_w'], prep['head_b'])

    def const_spec(shape):
        return pl.BlockSpec(shape, lambda b: (0,) * len(shape))

    in_specs = ([pl.BlockSpec((1, N, LE), lambda b: (b, 0, 0))]
                + [const_spec(w.shape) for w in weights])

    return pl.pallas_call(
        fc_attn_head_kernel,
        out_shape=jax.ShapeDtypeStruct((B, 1, LANES), jnp.float32),
        grid=(B,),
        in_specs=in_specs,
        out_specs=pl.BlockSpec((1, 1, LANES), lambda b: (b, 0, 0)),
        compiler_params=pltpu.CompilerParams(
            dimension_semantics=("parallel",),
            vmem_limit_bytes=VMEM_LIMIT),
    )(y3, *weights)


# --------------------------------------------------------------------------
# Parameter init (deterministic, shapes from FGN.__init__ with hsf=1)
# --------------------------------------------------------------------------
def init_params(key, embed_size, feature_size, seq_length, hidden_size, pre_length):
    E = embed_size
    ks = jax.random.split(key, 16)
    scale = 0.02
    p = {}
    p['embeddings'] = jax.random.normal(ks[0], (1, E), jnp.float32)
    w1 = scale * jax.random.normal(ks[1], (2, E, E), jnp.float32)
    b1 = scale * jax.random.normal(ks[2], (2, E), jnp.float32)
    w2 = scale * jax.random.normal(ks[3], (2, E, E), jnp.float32)
    b2 = scale * jax.random.normal(ks[4], (2, E), jnp.float32)
    w3 = scale * jax.random.normal(ks[5], (2, E, E), jnp.float32)
    b3 = scale * jax.random.normal(ks[6], (2, E), jnp.float32)
    # torch.einsum('bli,ii->bli', x, w) only reads diag(w): pack the diagonals.
    p['w_diag'] = jnp.stack([jnp.diagonal(w1[0]), jnp.diagonal(w1[1]),
                             jnp.diagonal(w2[0]), jnp.diagonal(w2[1]),
                             jnp.diagonal(w3[0]), jnp.diagonal(w3[1])], axis=0)
    p['b_all'] = jnp.concatenate([b1, b2, b3], axis=0)            # (6, E)
    p['embeddings_10'] = jax.random.normal(ks[7], (seq_length, 8), jnp.float32)

    def lin(k, fan_in, fan_out):
        kw, kb = jax.random.split(k)
        lim = 1.0 / (fan_in ** 0.5)
        w = jax.random.uniform(kw, (fan_in, fan_out), jnp.float32, -lim, lim)
        b = jax.random.uniform(kb, (1, fan_out), jnp.float32, -lim, lim)
        return w, b

    p['fc1_w'], p['fc1_b'] = lin(ks[8], E * 8, 64)
    p['fc2_w'], p['fc2_b'] = lin(ks[9], 64, hidden_size)
    p['fc3_w'], p['fc3_b'] = lin(ks[10], hidden_size, pre_length)  # pre_length == 80
    p['wha_w'], p['wha_b'] = lin(ks[11], 80, 80)
    p['wat_w'], _ = lin(ks[12], 80, 1)                             # no bias
    p['head_w'], p['head_b'] = lin(ks[13], 80, HEAD_OUT)
    return p


def prepare_params(p, seq_length):
    """One-time preprocessing (hoisted out of the jitted forward): fold
    embeddings_10 into fc1, zero-pad every matmul operand to 128 lanes (the
    zeros are inert through LeakyReLU / tanh / softmax pooling), and cast the
    MXU weight operands to bf16."""
    E = p['embeddings'].shape[1]
    L = seq_length

    def pad2(a, rows, cols):
        return jnp.pad(a, ((0, rows - a.shape[0]), (0, cols - a.shape[1])))

    # permute(0,1,3,2) @ embeddings_10 -> reshape -> fc1 folded into one weight:
    #   W1_fold[l*E + e, j] = sum_k embeddings_10[l, k] * fc1_w[e*8 + k, j]
    w1_fold = jnp.einsum('lk,ekj->lej', p['embeddings_10'],
                         p['fc1_w'].reshape(E, 8, -1)).reshape(L * E, -1)

    bf16 = jnp.bfloat16
    return {
        'emb': p['embeddings'].reshape(1, 1, E),
        'w_diag': p['w_diag'],
        'b_all': p['b_all'],
        'w1_fold': pad2(w1_fold, L * E, LANES).astype(bf16),
        'fc1_b': pad2(p['fc1_b'], 1, LANES),
        'fc2_w': pad2(p['fc2_w'], LANES, LANES).astype(bf16),
        'fc2_b': pad2(p['fc2_b'], 1, LANES),
        'fc3_w': pad2(p['fc3_w'], LANES, LANES).astype(bf16),
        'fc3_b': pad2(p['fc3_b'], 1, LANES),
        'wha_w': pad2(p['wha_w'], LANES, LANES).astype(bf16),
        'wha_b': pad2(p['wha_b'], 1, LANES),
        'wat_row': pad2(p['wat_w'].T, 1, LANES),          # f32, used on the VPU
        'head_w': pad2(p['head_w'], LANES, LANES).astype(bf16),
        'head_b': pad2(p['head_b'], 1, LANES),
    }


# --------------------------------------------------------------------------
# Forward pass (FFT glue in JAX, everything else in 2 gridded Pallas kernels)
# --------------------------------------------------------------------------
def fgn_forward(prep, x):
    emb = prep['emb']                                   # (1, 1, E)
    E = emb.shape[-1]
    xp = jnp.transpose(x, (0, 2, 1))                    # (B, N, L) as in torch
    B, N, L = xp.shape
    flat = xp.reshape(B, N * L)

    # TODO(synk): rfft/irfft have no Pallas primitive; computed with jnp.fft.
    # tokenEmb commutes with rfft (linearity), so only the (B, N*L) signal is
    # transformed; the embedding multiply is fused into the Pallas kernel.
    Xf = jnp.fft.rfft(flat, axis=1, norm='ortho')       # (B, Fq) complex64
    Xr = jnp.real(Xf).astype(jnp.float32)[:, :, None]   # (B, Fq, 1)
    Xi = jnp.imag(Xf).astype(jnp.float32)[:, :, None]

    zr, zi = fourier_gc(Xr, Xi, emb, prep['w_diag'], prep['b_all'])
    z = zr + 1j * zi                                    # (B, Fq, E), incl. "+bias"
    y = jnp.fft.irfft(z, n=N * L, axis=1, norm='ortho') # (B, N*L, E) float32

    # (B, N*L, E) -> (B, N, L*E) is a contiguous (free) reshape; it feeds the
    # pre-folded (L*E, 128) fc1 weight directly (no permute, no (., 8) slab).
    y3 = y.reshape(B, N, L * E).astype(jnp.bfloat16)

    out_pad = fc_attn_head(y3, prep)                    # (B, 1, 128) lane-dense
    return out_pad.reshape(B, LANES)[:, :HEAD_OUT]      # (B, 5)


if __name__ == "__main__":
    B, seq_length, feature_size = 2, 8, 4
    embed_size, hidden_size, pre_length = 4, 32, 80     # pre_length must equal model_dim=80

    key = jax.random.PRNGKey(0)
    kp, kx = jax.random.split(key)
    params = init_params(kp, embed_size, feature_size, seq_length,
                         hidden_size, pre_length)
    prep = prepare_params(params, seq_length)
    x = jax.random.normal(kx, (B, seq_length, feature_size), jnp.float32)

    out = jax.jit(fgn_forward)(prep, x)
    out = jax.block_until_ready(out)
    assert out.shape == (B, HEAD_OUT) and out.dtype == jnp.float32
    print("KERNEL_OK")
</pallas_src>

<mosaic_0001>
module attributes {stable_mosaic.version = 11 : i64} {
  func.func @fourier_gc_kernel(%arg0: i32, %arg1: i32, %arg2: memref<1x17x1xf32, #tpu.memory_space<vmem>>, %arg3: memref<1x17x1xf32, #tpu.memory_space<vmem>>, %arg4: memref<1x1x4xf32, #tpu.memory_space<vmem>>, %arg5: memref<6x4xf32, #tpu.memory_space<vmem>>, %arg6: memref<6x4xf32, #tpu.memory_space<vmem>>, %arg7: memref<1x17x4xf32, #tpu.memory_space<vmem>>, %arg8: memref<1x17x4xf32, #tpu.memory_space<vmem>>) attributes {dimension_semantics = [#tpu.dimension_semantics<parallel>, #tpu.dimension_semantics<parallel>], iteration_bounds = array<i64: 2, 1>, scalar_prefetch = 0 : i64, scratch_operands = 0 : i64, tpu.core_type = #tpu.core_type<tc>, window_params = [{transform_indices = @transform_0, window_bounds = array<i64: 1, 17, 1>}, {transform_indices = @transform_1, window_bounds = array<i64: 1, 17, 1>}, {pipeline_mode = #tpu.pipeline_mode<synchronous>, transform_indices = @transform_2, window_bounds = array<i64: 1, 1, 4>}, {pipeline_mode = #tpu.pipeline_mode<synchronous>, transform_indices = @transform_3, window_bounds = array<i64: 6, 4>}, {pipeline_mode = #tpu.pipeline_mode<synchronous>, transform_indices = @transform_4, window_bounds = array<i64: 6, 4>}, {transform_indices = @transform_5, window_bounds = array<i64: 1, 17, 4>}, {transform_indices = @transform_6, window_bounds = array<i64: 1, 17, 4>}]} {
    %c0 = arith.constant 0 : index
    %c0_0 = arith.constant 0 : index
    %c0_1 = arith.constant 0 : index
    %0 = vector.load %arg4[%c0, %c0_0, %c0_1] : memref<1x1x4xf32, #tpu.memory_space<vmem>>, vector<1x1x4xf32>
    %c0_2 = arith.constant 0 : index
    %c0_3 = arith.constant 0 : index
    %c0_4 = arith.constant 0 : index
    %1 = vector.load %arg2[%c0_2, %c0_3, %c0_4] : memref<1x17x1xf32, #tpu.memory_space<vmem>>, vector<1x17x1xf32>
    %2 = vector.broadcast %1 : vector<1x17x1xf32> to vector<1x17x4xf32>
    %3 = vector.broadcast %0 : vector<1x1x4xf32> to vector<1x17x4xf32>
    %4 = arith.mulf %2, %3 : vector<1x17x4xf32>
    %c0_5 = arith.constant 0 : index
    %c0_6 = arith.constant 0 : index
    %c0_7 = arith.constant 0 : index
    %5 = vector.load %arg3[%c0_5, %c0_6, %c0_7] : memref<1x17x1xf32, #tpu.memory_space<vmem>>, vector<1x17x1xf32>
    %6 = vector.broadcast %5 : vector<1x17x1xf32> to vector<1x17x4xf32>
    %7 = vector.broadcast %0 : vector<1x1x4xf32> to vector<1x17x4xf32>
    %8 = arith.mulf %6, %7 : vector<1x17x4xf32>
    %c0_8 = arith.constant 0 : index
    %c0_9 = arith.constant 0 : index
    %9 = vector.load %arg5[%c0_8, %c0_9] : memref<6x4xf32, #tpu.memory_space<vmem>>, vector<6x4xf32>
    %c0_10 = arith.constant 0 : index
    %c0_11 = arith.constant 0 : index
    %10 = vector.load %arg6[%c0_10, %c0_11] : memref<6x4xf32, #tpu.memory_space<vmem>>, vector<6x4xf32>
    %11 = vector.extract_strided_slice %9 {offsets = [0, 0], sizes = [1, 4], strides = [1, 1]} : vector<6x4xf32> to vector<1x4xf32>
    %12 = vector.shape_cast %11 : vector<1x4xf32> to vector<4xf32>
    %13 = vector.shape_cast %12 : vector<4xf32> to vector<1x1x4xf32>
    %14 = vector.extract_strided_slice %9 {offsets = [1, 0], sizes = [1, 4], strides = [1, 1]} : vector<6x4xf32> to vector<1x4xf32>
    %15 = vector.shape_cast %14 : vector<1x4xf32> to vector<4xf32>
    %16 = vector.shape_cast %15 : vector<4xf32> to vector<1x1x4xf32>
    %17 = vector.extract_strided_slice %9 {offsets = [2, 0], sizes = [1, 4], strides = [1, 1]} : vector<6x4xf32> to vector<1x4xf32>
    %18 = vector.shape_cast %17 : vector<1x4xf32> to vector<4xf32>
    %19 = vector.shape_cast %18 : vector<4xf32> to vector<1x1x4xf32>
    %20 = vector.extract_strided_slice %9 {offsets = [3, 0], sizes = [1, 4], strides = [1, 1]} : vector<6x4xf32> to vector<1x4xf32>
    %21 = vector.shape_cast %20 : vector<1x4xf32> to vector<4xf32>
    %22 = vector.shape_cast %21 : vector<4xf32> to vector<1x1x4xf32>
    %23 = vector.extract_strided_slice %9 {offsets = [4, 0], sizes = [1, 4], strides = [1, 1]} : vector<6x4xf32> to vector<1x4xf32>
    %24 = vector.shape_cast %23 : vector<1x4xf32> to vector<4xf32>
    %25 = vector.shape_cast %24 : vector<4xf32> to vector<1x1x4xf32>
    %26 = vector.extract_strided_slice %9 {offsets = [5, 0], sizes = [1, 4], strides = [1, 1]} : vector<6x4xf32> to vector<1x4xf32>
    %27 = vector.shape_cast %26 : vector<1x4xf32> to vector<4xf32>
    %28 = vector.shape_cast %27 : vector<4xf32> to vector<1x1x4xf32>
    %29 = vector.extract_strided_slice %10 {offsets = [0, 0], sizes = [1, 4], strides = [1, 1]} : vector<6x4xf32> to vector<1x4xf32>
    %30 = vector.shape_cast %29 : vector<1x4xf32> to vector<4xf32>
    %31 = vector.shape_cast %30 : vector<4xf32> to vector<1x1x4xf32>
    %32 = vector.extract_strided_slice %10 {offsets = [1, 0], sizes = [1, 4], strides = [1, 1]} : vector<6x4xf32> to vector<1x4xf32>
    %33 = vector.shape_cast %32 : vector<1x4xf32> to vector<4xf32>
    %34 = vector.shape_cast %33 : vector<4xf32> to vector<1x1x4xf32>
    %35 = vector.extract_strided_slice %10 {offsets = [2, 0], sizes = [1, 4], strides = [1, 1]} : vector<6x4xf32> to vector<1x4xf32>
    %36 = vector.shape_cast %35 : vector<1x4xf32> to vector<4xf32>
    %37 = vector.shape_cast %36 : vector<4xf32> to vector<1x1x4xf32>
    %38 = vector.extract_strided_slice %10 {offsets = [3, 0], sizes = [1, 4], strides = [1, 1]} : vector<6x4xf32> to vector<1x4xf32>
    %39 = vector.shape_cast %38 : vector<1x4xf32> to vector<4xf32>
    %40 = vector.shape_cast %39 : vector<4xf32> to vector<1x1x4xf32>
    %41 = vector.extract_strided_slice %10 {offsets = [4, 0], sizes = [1, 4], strides = [1, 1]} : vector<6x4xf32> to vector<1x4xf32>
    %42 = vector.shape_cast %41 : vector<1x4xf32> to vector<4xf32>
    %43 = vector.shape_cast %42 : vector<4xf32> to vector<1x1x4xf32>
    %44 = vector.extract_strided_slice %10 {offsets = [5, 0], sizes = [1, 4], strides = [1, 1]} : vector<6x4xf32> to vector<1x4xf32>
    %45 = vector.shape_cast %44 : vector<1x4xf32> to vector<4xf32>
    %46 = vector.shape_cast %45 : vector<4xf32> to vector<1x1x4xf32>
    %47 = vector.broadcast %13 : vector<1x1x4xf32> to vector<1x17x4xf32>
    %48 = arith.mulf %4, %47 : vector<1x17x4xf32>
    %49 = vector.broadcast %16 : vector<1x1x4xf32> to vector<1x17x4xf32>
    %50 = arith.mulf %8, %49 : vector<1x17x4xf32>
    %51 = arith.subf %48, %50 : vector<1x17x4xf32>
    %52 = vector.broadcast %31 : vector<1x1x4xf32> to vector<1x17x4xf32>
    %53 = arith.addf %51, %52 : vector<1x17x4xf32>
    %cst = arith.constant 0.000000e+00 : f32
    %54 = vector.broadcast %cst : f32 to vector<1x17x4xf32>
    %55 = arith.maximumf %53, %54 : vector<1x17x4xf32>
    %56 = vector.broadcast %13 : vector<1x1x4xf32> to vector<1x17x4xf32>
    %57 = arith.mulf %8, %56 : vector<1x17x4xf32>
    %58 = vector.broadcast %16 : vector<1x1x4xf32> to vector<1x17x4xf32>
    %59 = arith.mulf %4, %58 : vector<1x17x4xf32>
    %60 = arith.addf %57, %59 : vector<1x17x4xf32>
    %61 = vector.broadcast %34 : vector<1x1x4xf32> to vector<1x17x4xf32>
    %62 = arith.addf %60, %61 : vector<1x17x4xf32>
    %cst_12 = arith.constant 0.000000e+00 : f32
    %63 = vector.broadcast %cst_12 : f32 to vector<1x17x4xf32>
    %64 = arith.maximumf %62, %63 : vector<1x17x4xf32>
    %cst_13 = arith.constant -0.00999999977 : f32
    %cst_14 = arith.constant 0.00999999977 : f32
    %65 = vector.broadcast %cst_13 : f32 to vector<1x17x4xf32>
    %66 = arith.maximumf %65, %55 : vector<1x17x4xf32>
    %67 = vector.broadcast %cst_14 : f32 to vector<1x17x4xf32>
    %68 = arith.minimumf %67, %66 : vector<1x17x4xf32>
    %69 = arith.subf %55, %68 : vector<1x17x4xf32>
    %cst_15 = arith.constant -0.00999999977 : f32
    %cst_16 = arith.constant 0.00999999977 : f32
    %70 = vector.broadcast %cst_15 : f32 to vector<1x17x4xf32>
    %71 = arith.maximumf %70, %64 : vector<1x17x4xf32>
    %72 = vector.broadcast %cst_16 : f32 to vector<1x17x4xf32>
    %73 = arith.minimumf %72, %71 : vector<1x17x4xf32>
    %74 = arith.subf %64, %73 : vector<1x17x4xf32>
    %75 = vector.broadcast %19 : vector<1x1x4xf32> to vector<1x17x4xf32>
    %76 = arith.mulf %55, %75 : vector<1x17x4xf32>
    %77 = vector.broadcast %22 : vector<1x1x4xf32> to vector<1x17x4xf32>
    %78 = arith.mulf %64, %77 : vector<1x17x4xf32>
    %79 = arith.subf %76, %78 : vector<1x17x4xf32>
    %80 = vector.broadcast %37 : vector<1x1x4xf32> to vector<1x17x4xf32>
    %81 = arith.addf %79, %80 : vector<1x17x4xf32>
    %cst_17 = arith.constant 0.000000e+00 : f32
    %82 = vector.broadcast %cst_17 : f32 to vector<1x17x4xf32>
    %83 = arith.maximumf %81, %82 : vector<1x17x4xf32>
    %84 = vector.broadcast %19 : vector<1x1x4xf32> to vector<1x17x4xf32>
    %85 = arith.mulf %64, %84 : vector<1x17x4xf32>
    %86 = vector.broadcast %22 : vector<1x1x4xf32> to vector<1x17x4xf32>
    %87 = arith.mulf %55, %86 : vector<1x17x4xf32>
    %88 = arith.addf %85, %87 : vector<1x17x4xf32>
    %89 = vector.broadcast %40 : vector<1x1x4xf32> to vector<1x17x4xf32>
    %90 = arith.addf %88, %89 : vector<1x17x4xf32>
    %cst_18 = arith.constant 0.000000e+00 : f32
    %91 = vector.broadcast %cst_18 : f32 to vector<1x17x4xf32>
    %92 = arith.maximumf %90, %91 : vector<1x17x4xf32>
    %cst_19 = arith.constant -0.00999999977 : f32
    %cst_20 = arith.constant 0.00999999977 : f32
    %93 = vector.broadcast %cst_19 : f32 to vector<1x17x4xf32>
    %94 = arith.maximumf %93, %83 : vector<1x17x4xf32>
    %95 = vector.broadcast %cst_20 : f32 to vector<1x17x4xf32>
    %96 = arith.minimumf %95, %94 : vector<1x17x4xf32>
    %97 = arith.subf %83, %96 : vector<1x17x4xf32>
    %98 = arith.addf %97, %69 : vector<1x17x4xf32>
    %cst_21 = arith.constant -0.00999999977 : f32
    %cst_22 = arith.constant 0.00999999977 : f32
    %99 = vector.broadcast %cst_21 : f32 to vector<1x17x4xf32>
    %100 = arith.maximumf %99, %92 : vector<1x17x4xf32>
    %101 = vector.broadcast %cst_22 : f32 to vector<1x17x4xf32>
    %102 = arith.minimumf %101, %100 : vector<1x17x4xf32>
    %103 = arith.subf %92, %102 : vector<1x17x4xf32>
    %104 = arith.addf %103, %74 : vector<1x17x4xf32>
    %105 = vector.broadcast %25 : vector<1x1x4xf32> to vector<1x17x4xf32>
    %106 = arith.mulf %83, %105 : vector<1x17x4xf32>
    %107 = vector.broadcast %28 : vector<1x1x4xf32> to vector<1x17x4xf32>
    %108 = arith.mulf %92, %107 : vector<1x17x4xf32>
    %109 = arith.subf %106, %108 : vector<1x17x4xf32>
    %110 = vector.broadcast %43 : vector<1x1x4xf32> to vector<1x17x4xf32>
    %111 = arith.addf %109, %110 : vector<1x17x4xf32>
    %cst_23 = arith.constant 0.000000e+00 : f32
    %112 = vector.broadcast %cst_23 : f32 to vector<1x17x4xf32>
    %113 = arith.maximumf %111, %112 : vector<1x17x4xf32>
    %114 = vector.broadcast %25 : vector<1x1x4xf32> to vector<1x17x4xf32>
    %115 = arith.mulf %92, %114 : vector<1x17x4xf32>
    %116 = vector.broadcast %28 : vector<1x1x4xf32> to vector<1x17x4xf32>
    %117 = arith.mulf %83, %116 : vector<1x17x4xf32>
    %118 = arith.addf %115, %117 : vector<1x17x4xf32>
    %119 = vector.broadcast %46 : vector<1x1x4xf32> to vector<1x17x4xf32>
    %120 = arith.addf %118, %119 : vector<1x17x4xf32>
    %cst_24 = arith.constant 0.000000e+00 : f32
    %121 = vector.broadcast %cst_24 : f32 to vector<1x17x4xf32>
    %122 = arith.maximumf %120, %121 : vector<1x17x4xf32>
    %cst_25 = arith.constant -0.00999999977 : f32
    %cst_26 = arith.constant 0.00999999977 : f32
    %123 = vector.broadcast %cst_25 : f32 to vector<1x17x4xf32>
    %124 = arith.maximumf %123, %113 : vector<1x17x4xf32>
    %125 = vector.broadcast %cst_26 : f32 to vector<1x17x4xf32>
    %126 = arith.minimumf %125, %124 : vector<1x17x4xf32>
    %127 = arith.subf %113, %126 : vector<1x17x4xf32>
    %128 = arith.addf %127, %98 : vector<1x17x4xf32>
    %129 = arith.addf %128, %4 : vector<1x17x4xf32>
    %c0_27 = arith.constant 0 : index
    %c0_28 = arith.constant 0 : index
    %c0_29 = arith.constant 0 : index
    %130 = vector.load %arg7[%c0_27, %c0_28, %c0_29] : memref<1x17x4xf32, #tpu.memory_space<vmem>>, vector<1x17x4xf32>
    tpu.vector_store %arg7[%c0_27, %c0_28, %c0_29], %129 {strides = array<i32>} : memref<1x17x4xf32, #tpu.memory_space<vmem>>, vector<1x17x4xf32>,
    %cst_30 = arith.constant -0.00999999977 : f32
    %cst_31 = arith.constant 0.00999999977 : f32
    %131 = vector.broadcast %cst_30 : f32 to vector<1x17x4xf32>
    %132 = arith.maximumf %131, %122 : vector<1x17x4xf32>
    %133 = vector.broadcast %cst_31 : f32 to vector<1x17x4xf32>
    %134 = arith.minimumf %133, %132 : vector<1x17x4xf32>
    %135 = arith.subf %122, %134 : vector<1x17x4xf32>
    %136 = arith.addf %135, %104 : vector<1x17x4xf32>
    %137 = arith.addf %136, %8 : vector<1x17x4xf32>
    %c0_32 = arith.constant 0 : index
    %c0_33 = arith.constant 0 : index
    %c0_34 = arith.constant 0 : index
    %138 = vector.load %arg8[%c0_32, %c0_33, %c0_34] : memref<1x17x4xf32, #tpu.memory_space<vmem>>, vector<1x17x4xf32>
    tpu.vector_store %arg8[%c0_32, %c0_33, %c0_34], %137 {strides = array<i32>} : memref<1x17x4xf32, #tpu.memory_space<vmem>>, vector<1x17x4xf32>,
    return
  }
  func.func @transform_0(%arg0: i32, %arg1: i32) -> (i32, i32, i32) {
    %c0_i32 = arith.constant 0 : i32
    %c0_i32_0 = arith.constant 0 : i32
    return %arg0, %arg1, %c0_i32 : i32, i32, i32
  }
  func.func @transform_1(%arg0: i32, %arg1: i32) -> (i32, i32, i32) {
    %c0_i32 = arith.constant 0 : i32
    %c0_i32_0 = arith.constant 0 : i32
    return %arg0, %arg1, %c0_i32 : i32, i32, i32
  }
  func.func @transform_2(%arg0: i32, %arg1: i32) -> (i32, i32, i32) {
    %c0_i32 = arith.constant 0 : i32
    %c0_i32_0 = arith.constant 0 : i32
    %c0_i32_1 = arith.constant 0 : i32
    %c0_i32_2 = arith.constant 0 : i32
    return %c0_i32, %c0_i32_0, %c0_i32_1 : i32, i32, i32
  }
  func.func @transform_3(%arg0: i32, %arg1: i32) -> (i32, i32) {
    %c0_i32 = arith.constant 0 : i32
    %c0_i32_0 = arith.constant 0 : i32
    %c0_i32_1 = arith.constant 0 : i32
    return %c0_i32, %c0_i32_0 : i32, i32
  }
  func.func @transform_4(%arg0: i32, %arg1: i32) -> (i32, i32) {
    %c0_i32 = arith.constant 0 : i32
    %c0_i32_0 = arith.constant 0 : i32
    %c0_i32_1 = arith.constant 0 : i32
    return %c0_i32, %c0_i32_0 : i32, i32
  }
  func.func @transform_5(%arg0: i32, %arg1: i32) -> (i32, i32, i32) {
    %c0_i32 = arith.constant 0 : i32
    %c0_i32_0 = arith.constant 0 : i32
    return %arg0, %arg1, %c0_i32 : i32, i32, i32
  }
  func.func @transform_6(%arg0: i32, %arg1: i32) -> (i32, i32, i32) {
    %c0_i32 = arith.constant 0 : i32
    %c0_i32_0 = arith.constant 0 : i32
    return %arg0, %arg1, %c0_i32 : i32, i32, i32
  }
}

module attributes {stable_mosaic.version = 11 : i64} {
  func.func @fc_attn_head_kernel(%arg0: i32, %arg1: memref<1x4x32xbf16, #tpu.memory_space<vmem>>, %arg2: memref<32x128xbf16, #tpu.memory_space<vmem>>, %arg3: memref<1x128xf32, #tpu.memory_space<vmem>>, %arg4: memref<128x128xbf16, #tpu.memory_space<vmem>>, %arg5: memref<1x128xf32, #tpu.memory_space<vmem>>, %arg6: memref<128x128xbf16, #tpu.memory_space<vmem>>, %arg7: memref<1x128xf32, #tpu.memory_space<vmem>>, %arg8: memref<128x128xbf16, #tpu.memory_space<vmem>>, %arg9: memref<1x128xf32, #tpu.memory_space<vmem>>, %arg10: memref<1x128xf32, #tpu.memory_space<vmem>>, %arg11: memref<128x128xbf16, #tpu.memory_space<vmem>>, %arg12: memref<1x128xf32, #tpu.memory_space<vmem>>, %arg13: memref<1x1x128xf32, #tpu.memory_space<vmem>>) attributes {dimension_semantics = [#tpu.dimension_semantics<parallel>], iteration_bounds = array<i64: 2>, scalar_prefetch = 0 : i64, scratch_operands = 0 : i64, tpu.core_type = #tpu.core_type<tc>, window_params = [{transform_indices = @transform_0, window_bounds = array<i64: 1, 4, 32>}, {pipeline_mode = #tpu.pipeline_mode<synchronous>, transform_indices = @transform_1, window_bounds = array<i64: 32, 128>}, {pipeline_mode = #tpu.pipeline_mode<synchronous>, transform_indices = @transform_2, window_bounds = array<i64: 1, 128>}, {pipeline_mode = #tpu.pipeline_mode<synchronous>, transform_indices = @transform_3, window_bounds = array<i64: 128, 128>}, {pipeline_mode = #tpu.pipeline_mode<synchronous>, transform_indices = @transform_4, window_bounds = array<i64: 1, 128>}, {pipeline_mode = #tpu.pipeline_mode<synchronous>, transform_indices = @transform_5, window_bounds = array<i64: 128, 128>}, {pipeline_mode = #tpu.pipeline_mode<synchronous>, transform_indices = @transform_6, window_bounds = array<i64: 1, 128>}, {pipeline_mode = #tpu.pipeline_mode<synchronous>, transform_indices = @transform_7, window_bounds = array<i64: 128, 128>}, {pipeline_mode = #tpu.pipeline_mode<synchronous>, transform_indices = @transform_8, window_bounds = array<i64: 1, 128>}, {pipeline_mode = #tpu.pipeline_mode<synchronous>, transform_indices = @transform_9, window_bounds = array<i64: 1, 128>}, {pipeline_mode = #tpu.pipeline_mode<synchronous>, transform_indices = @transform_10, window_bounds = array<i64: 128, 128>}, {pipeline_mode = #tpu.pipeline_mode<synchronous>, transform_indices = @transform_11, window_bounds = array<i64: 1, 128>}, {transform_indices = @transform_12, window_bounds = array<i64: 1, 1, 128>}]} {
    %c0 = arith.constant 0 : index
    %c0_0 = arith.constant 0 : index
    %c0_1 = arith.constant 0 : index
    %0 = vector.load %arg1[%c0, %c0_0, %c0_1] : memref<1x4x32xbf16, #tpu.memory_space<vmem>>, vector<1x4x32xbf16>
    %1 = vector.shape_cast %0 : vector<1x4x32xbf16> to vector<4x32xbf16>
    %c0_2 = arith.constant 0 : index
    %c0_3 = arith.constant 0 : index
    %2 = vector.load %arg2[%c0_2, %c0_3] : memref<32x128xbf16, #tpu.memory_space<vmem>>, vector<32x128xbf16>
    %cst = arith.constant dense<0.000000e+00> : vector<4x128xf32>
    %3 = tpu.matmul %1, %2, %cst {dimension_numbers = #tpu.dot_dimension_numbers<[1], [0], [0], [1], [0, 0, 1, 1], [], []>} : vector<4x32xbf16>, vector<32x128xbf16>, vector<4x128xf32> -> vector<4x128xf32>
    %c0_4 = arith.constant 0 : index
    %c0_5 = arith.constant 0 : index
    %4 = vector.load %arg3[%c0_4, %c0_5] : memref<1x128xf32, #tpu.memory_space<vmem>>, vector<1x128xf32>
    %5 = vector.broadcast %4 : vector<1x128xf32> to vector<4x128xf32>
    %6 = arith.addf %3, %5 : vector<4x128xf32>
    %cst_6 = arith.constant 0.00999999977 : f32
    %7 = vector.broadcast %cst_6 : f32 to vector<4x128xf32>
    %8 = arith.mulf %7, %6 : vector<4x128xf32>
    %9 = arith.maximumf %6, %8 : vector<4x128xf32>
    %10 = arith.truncf %9 : vector<4x128xf32> to vector<4x128xbf16>
    %c0_7 = arith.constant 0 : index
    %c0_8 = arith.constant 0 : index
    %11 = vector.load %arg4[%c0_7, %c0_8] : memref<128x128xbf16, #tpu.memory_space<vmem>>, vector<128x128xbf16>
    %cst_9 = arith.constant dense<0.000000e+00> : vector<4x128xf32>
    %12 = tpu.matmul %10, %11, %cst_9 {dimension_numbers = #tpu.dot_dimension_numbers<[1], [0], [0], [1], [0, 0, 1, 1], [], []>} : vector<4x128xbf16>, vector<128x128xbf16>, vector<4x128xf32> -> vector<4x128xf32>
    %c0_10 = arith.constant 0 : index
    %c0_11 = arith.constant 0 : index
    %13 = vector.load %arg5[%c0_10, %c0_11] : memref<1x128xf32, #tpu.memory_space<vmem>>, vector<1x128xf32>
    %14 = vector.broadcast %13 : vector<1x128xf32> to vector<4x128xf32>
    %15 = arith.addf %12, %14 : vector<4x128xf32>
    %cst_12 = arith.constant 0.00999999977 : f32
    %16 = vector.broadcast %cst_12 : f32 to vector<4x128xf32>
    %17 = arith.mulf %16, %15 : vector<4x128xf32>
    %18 = arith.maximumf %15, %17 : vector<4x128xf32>
    %19 = arith.truncf %18 : vector<4x128xf32> to vector<4x128xbf16>
    %c0_13 = arith.constant 0 : index
    %c0_14 = arith.constant 0 : index
    %20 = vector.load %arg6[%c0_13, %c0_14] : memref<128x128xbf16, #tpu.memory_space<vmem>>, vector<128x128xbf16>
    %cst_15 = arith.constant dense<0.000000e+00> : vector<4x128xf32>
    %21 = tpu.matmul %19, %20, %cst_15 {dimension_numbers = #tpu.dot_dimension_numbers<[1], [0], [0], [1], [0, 0, 1, 1], [], []>} : vector<4x128xbf16>, vector<128x128xbf16>, vector<4x128xf32> -> vector<4x128xf32>
    %c0_16 = arith.constant 0 : index
    %c0_17 = arith.constant 0 : index
    %22 = vector.load %arg7[%c0_16, %c0_17] : memref<1x128xf32, #tpu.memory_space<vmem>>, vector<1x128xf32>
    %23 = vector.broadcast %22 : vector<1x128xf32> to vector<4x128xf32>
    %24 = arith.addf %21, %23 : vector<4x128xf32>
    %25 = arith.truncf %24 : vector<4x128xf32> to vector<4x128xbf16>
    %c0_18 = arith.constant 0 : index
    %c0_19 = arith.constant 0 : index
    %26 = vector.load %arg8[%c0_18, %c0_19] : memref<128x128xbf16, #tpu.memory_space<vmem>>, vector<128x128xbf16>
    %cst_20 = arith.constant dense<0.000000e+00> : vector<4x128xf32>
    %27 = tpu.matmul %25, %26, %cst_20 {dimension_numbers = #tpu.dot_dimension_numbers<[1], [0], [0], [1], [0, 0, 1, 1], [], []>} : vector<4x128xbf16>, vector<128x128xbf16>, vector<4x128xf32> -> vector<4x128xf32>
    %c0_21 = arith.constant 0 : index
    %c0_22 = arith.constant 0 : index
    %28 = vector.load %arg9[%c0_21, %c0_22] : memref<1x128xf32, #tpu.memory_space<vmem>>, vector<1x128xf32>
    %29 = vector.broadcast %28 : vector<1x128xf32> to vector<4x128xf32>
    %30 = arith.addf %27, %29 : vector<4x128xf32>
    %31 = math.tanh %30 : vector<4x128xf32>
    %c0_23 = arith.constant 0 : index
    %c0_24 = arith.constant 0 : index
    %32 = vector.load %arg10[%c0_23, %c0_24] : memref<1x128xf32, #tpu.memory_space<vmem>>, vector<1x128xf32>
    %33 = vector.broadcast %32 : vector<1x128xf32> to vector<4x128xf32>
    %34 = arith.mulf %31, %33 : vector<4x128xf32>
    %cst_25 = arith.constant dense<0.000000e+00> : vector<4xf32>
    %35 = vector.multi_reduction <add>, %34, %cst_25 [1] : vector<4x128xf32> to vector<4xf32>
    %36 = vector.shape_cast %35 : vector<4xf32> to vector<4x1xf32>
    %cst_26 = arith.constant dense<0xFF800000> : vector<1xf32>
    %37 = vector.multi_reduction <maximumf>, %36, %cst_26 [0] : vector<4x1xf32> to vector<1xf32>
    %38 = vector.shape_cast %37 : vector<1xf32> to vector<1x1xf32>
    %39 = vector.broadcast %38 : vector<1x1xf32> to vector<4x1xf32>
    %40 = arith.subf %36, %39 : vector<4x1xf32>
    %41 = math.exp %40 : vector<4x1xf32>
    %cst_27 = arith.constant dense<0.000000e+00> : vector<1xf32>
    %42 = vector.multi_reduction <add>, %41, %cst_27 [0] : vector<4x1xf32> to vector<1xf32>
    %43 = vector.shape_cast %42 : vector<1xf32> to vector<1x1xf32>
    %44 = tpu.reciprocal %43 {approx = true} : vector<1x1xf32> -> vector<1x1xf32>
    %45 = vector.broadcast %44 : vector<1x1xf32> to vector<4x1xf32>
    %46 = arith.mulf %41, %45 : vector<4x1xf32>
    %47 = vector.broadcast %46 : vector<4x1xf32> to vector<4x128xf32>
    %48 = arith.mulf %47, %31 : vector<4x128xf32>
    %cst_28 = arith.constant dense<0.000000e+00> : vector<128xf32>
    %49 = vector.multi_reduction <add>, %48, %cst_28 [0] : vector<4x128xf32> to vector<128xf32>
    %50 = vector.shape_cast %49 : vector<128xf32> to vector<1x128xf32>
    %51 = arith.truncf %50 : vector<1x128xf32> to vector<1x128xbf16>
    %c0_29 = arith.constant 0 : index
    %c0_30 = arith.constant 0 : index
    %52 = vector.load %arg11[%c0_29, %c0_30] : memref<128x128xbf16, #tpu.memory_space<vmem>>, vector<128x128xbf16>
    %cst_31 = arith.constant dense<0.000000e+00> : vector<1x128xf32>
    %53 = tpu.matmul %51, %52, %cst_31 {dimension_numbers = #tpu.dot_dimension_numbers<[1], [0], [0], [1], [0, 0, 1, 1], [], []>} : vector<1x128xbf16>, vector<128x128xbf16>, vector<1x128xf32> -> vector<1x128xf32>
    %c0_32 = arith.constant 0 : index
    %c0_33 = arith.constant 0 : index
    %54 = vector.load %arg12[%c0_32, %c0_33] : memref<1x128xf32, #tpu.memory_space<vmem>>, vector<1x128xf32>
    %55 = arith.addf %53, %54 : vector<1x128xf32>
    %56 = vector.shape_cast %55 : vector<1x128xf32> to vector<1x1x128xf32>
    %c0_34 = arith.constant 0 : index
    %c0_35 = arith.constant 0 : index
    %c0_36 = arith.constant 0 : index
    %57 = vector.load %arg13[%c0_34, %c0_35, %c0_36] : memref<1x1x128xf32, #tpu.memory_space<vmem>>, vector<1x1x128xf32>
    tpu.vector_store %arg13[%c0_34, %c0_35, %c0_36], %56 {strides = array<i32>} : memref<1x1x128xf32, #tpu.memory_space<vmem>>, vector<1x1x128xf32>,
    return
  }
  func.func @transform_0(%arg0: i32) -> (i32, i32, i32) {
    %c0_i32 = arith.constant 0 : i32
    %c0_i32_0 = arith.constant 0 : i32
    %c0_i32_1 = arith.constant 0 : i32
    return %arg0, %c0_i32, %c0_i32_0 : i32, i32, i32
  }
  func.func @transform_1(%arg0: i32) -> (i32, i32) {
    %c0_i32 = arith.constant 0 : i32
    %c0_i32_0 = arith.constant 0 : i32
    %c0_i32_1 = arith.constant 0 : i32
    return %c0_i32, %c0_i32_0 : i32, i32
  }
  func.func @transform_2(%arg0: i32) -> (i32, i32) {
    %c0_i32 = arith.constant 0 : i32
    %c0_i32_0 = arith.constant 0 : i32
    %c0_i32_1 = arith.constant 0 : i32
    return %c0_i32, %c0_i32_0 : i32, i32
  }
  func.func @transform_3(%arg0: i32) -> (i32, i32) {
    %c0_i32 = arith.constant 0 : i32
    %c0_i32_0 = arith.constant 0 : i32
    %c0_i32_1 = arith.constant 0 : i32
    return %c0_i32, %c0_i32_0 : i32, i32
  }
  func.func @transform_4(%arg0: i32) -> (i32, i32) {
    %c0_i32 = arith.constant 0 : i32
    %c0_i32_0 = arith.constant 0 : i32
    %c0_i32_1 = arith.constant 0 : i32
    return %c0_i32, %c0_i32_0 : i32, i32
  }
  func.func @transform_5(%arg0: i32) -> (i32, i32) {
    %c0_i32 = arith.constant 0 : i32
    %c0_i32_0 = arith.constant 0 : i32
    %c0_i32_1 = arith.constant 0 : i32
    return %c0_i32, %c0_i32_0 : i32, i32
  }
  func.func @transform_6(%arg0: i32) -> (i32, i32) {
    %c0_i32 = arith.constant 0 : i32
    %c0_i32_0 = arith.constant 0 : i32
    %c0_i32_1 = arith.constant 0 : i32
    return %c0_i32, %c0_i32_0 : i32, i32
  }
  func.func @transform_7(%arg0: i32) -> (i32, i32) {
    %c0_i32 = arith.constant 0 : i32
    %c0_i32_0 = arith.constant 0 : i32
    %c0_i32_1 = arith.constant 0 : i32
    return %c0_i32, %c0_i32_0 : i32, i32
  }
  func.func @transform_8(%arg0: i32) -> (i32, i32) {
    %c0_i32 = arith.constant 0 : i32
    %c0_i32_0 = arith.constant 0 : i32
    %c0_i32_1 = arith.constant 0 : i32
    return %c0_i32, %c0_i32_0 : i32, i32
  }
  func.func @transform_9(%arg0: i32) -> (i32, i32) {
    %c0_i32 = arith.constant 0 : i32
    %c0_i32_0 = arith.constant 0 : i32
    %c0_i32_1 = arith.constant 0 : i32
    return %c0_i32, %c0_i32_0 : i32, i32
  }
  func.func @transform_10(%arg0: i32) -> (i32, i32) {
    %c0_i32 = arith.constant 0 : i32
    %c0_i32_0 = arith.constant 0 : i32
    %c0_i32_1 = arith.constant 0 : i32
    return %c0_i32, %c0_i32_0 : i32, i32
  }
  func.func @transform_11(%arg0: i32) -> (i32, i32) {
    %c0_i32 = arith.constant 0 : i32
    %c0_i32_0 = arith.constant 0 : i32
    %c0_i32_1 = arith.constant 0 : i32
    return %c0_i32, %c0_i32_0 : i32, i32
  }
  func.func @transform_12(%arg0: i32) -> (i32, i32, i32) {
    %c0_i32 = arith.constant 0 : i32
    %c0_i32_0 = arith.constant 0 : i32
    %c0_i32_1 = arith.constant 0 : i32
    return %arg0, %c0_i32, %c0_i32_0 : i32, i32, i32
  }
}

</mosaic_0001>

<bundles_post_ra>
// kernel: reverse.0
= control target key start
LH: loop header
LB: loop body
LE: loop exit
PB: predicated region body
PF: predicated region fallthrough
CT: control target
= control target key end

     0   :  { %v57_v3 = vlaneseq  ;;  %v63_v5 = vld [vmem:[#allocation0 + $0x7] ss:$-1 sm:$0xff]  ;;  %v91_v6 = vld [vmem:[#allocation0 + $0x1f] ss:$-1 sm:$0xff]  ;;  %s204_s0 = inlined_call_operand.vmem [shape: f32[2,4,15], index: 0, kind: input, shape index: {}]   ;;  %s205_s1 = inlined_call_operand.vmem [shape: f32[2,4,15], index: 1, kind: output, shape index: {}]  }
   0x1   :  { %v37_v0 = vld [vmem:[%s204_s0] sm:$0xff]  ;;  %v39_v1 = vld [vmem:[%s204_s0 + $0x8] sm:$0xff]  ;;  %v41_v2 = vld [vmem:[%s204_s0 + $0x10] sm:$0xff]  ;;  %v64_v7 = vrot.slane %v63_v5, 1  ;;  %v92_v8 = vrot.slane %v91_v6, 1 }
   0x2   :  { %38 = vst [vmem:[#allocation0 + $0x8] sm:$0xff] %v37_v0  ;;  %40 = vst [vmem:[#allocation0 + $0x10] sm:$0xff] %v39_v1  ;;  %v43_v4 = vld [vmem:[%s204_s0 + $0x18] sm:$0xff]  ;;  %v58_v9 = vshrl.u32 %v57_v3, 7 }
   0x3   :  { %42 = vst [vmem:[#allocation0 + $0x20] sm:$0xff] %v41_v2  ;;  %44 = vst [vmem:[#allocation0 + $0x28] sm:$0xff] %v43_v4 }
   0x4   :  { %65 = vst [vmem:[#allocation1 + $0x8] sm:$0xff] %v64_v7  ;;  %93 = vst [vmem:[#allocation1 + $0x18] sm:$0xff] %v92_v8  ;;  %vm59_vm0 = vcmp.lt.s32.totalorder %v58_v9, 7 }
   0x9   :  { %v50_v10 = vld [vmem:[#allocation0 + $0xf] ss:$-1 sm:$0xff]  ;;  %v55_v11 = vld [vmem:[#allocation0 + $0x17] ss:$-1 sm:$0xff] }
   0xa   :  { %v68_v12 = vld [vmem:[#allocation0 + $0xf] ss:$-1 sm:$0xff]  ;;  %v51_v13 = vrot.slane %v50_v10, 1  ;;  %v56_v14 = vrot.slane %v55_v11, 1  ;;  %v78_v16 = vld [vmem:[#allocation0 + $0x27] ss:$-1 sm:$0xff] }
   0xb   :  { %v69_v15 = vrot.slane %v68_v12, 1  ;;  %v79_v17 = vrot.slane %v78_v16, 1  ;;  %v83_v18 = vld [vmem:[#allocation0 + $0x2f] ss:$-1 sm:$0xff]  ;;  %v96_v19 = vld [vmem:[#allocation0 + $0x27] ss:$-1 sm:$0xff] }
   0xc   :  { %52 = vst [vmem:[#allocation1] sm:$0xff] %v51_v13  ;;  %v84_v20 = vrot.slane %v83_v18, 1  ;;  %v97_v21 = vrot.slane %v96_v19, 1 }
   0xd   :  { %73 = vst.msk [vmem:[#allocation1 + $0x8] sm:$0xff] %vm59_vm0, %v69_v15  ;;  %60 = vst.msk [vmem:[#allocation1] sm:$0xff] %vm59_vm0, %v56_v14 }
   0xe   :  { %80 = vst [vmem:[#allocation1 + $0x10] sm:$0xff] %v79_v17  ;;  %101 = vst.msk [vmem:[#allocation1 + $0x18] sm:$0xff] %vm59_vm0, %v97_v21 }
   0xf   :  { %88 = vst.msk [vmem:[#allocation1 + $0x10] sm:$0xff] %vm59_vm0, %v84_v20 }
  0x14   :  { %v138_v22 = vld [vmem:[#allocation1 + $0x8] sm:$0xff]  ;;  %v136_v23 = vld [vmem:[#allocation1] sm:$0xff] }
  0x15   :  { %139 = vst [vmem:[%s205_s1 + $0x8] sm:$0xff] %v138_v22  ;;  %137 = vst [vmem:[%s205_s1] sm:$0xff] %v136_v23  ;;  %v142_v25 = vld [vmem:[#allocation1 + $0x18] sm:$0xff] }
  0x16   :  { %v140_v24 = vld [vmem:[#allocation1 + $0x10] sm:$0xff]  ;;  %143 = vst [vmem:[%s205_s1 + $0x18] sm:$0xff] %v142_v25 }
  0x17   :  { %141 = vst [vmem:[%s205_s1 + $0x10] sm:$0xff] %v140_v24 }

// kernel: fgn_forward.2
= control target key start
LH: loop header
LB: loop body
LE: loop exit
PB: predicated region body
PF: predicated region fallthrough
CT: control target
= control target key end

     0   :  { %s893_s21 = smov 0   ;;  %s895_s22 = smov 0   ;;  %s1083_s0 = inlined_call_operand.vmem [shape: f32[2,17,1], index: 0, kind: input, shape index: {}]   ;;  %s1084_s1 = inlined_call_operand.vmem [shape: f32[2,17,1], index: 1, kind: input, shape index: {}]   ;;  %s1085_s2 = inlined_call_operand.vmem [shape: f32[1,1,4], index: 2, kind: input, shape index: {}]   ;;  %s1086_s3 = inlined_call_operand.vmem [shape: f32[6,4], index: 3, kind: input, shape index: {}]   ;;  %s1087_s4 = inlined_call_operand.vmem [shape: f32[6,4], index: 4, kind: input, shape index: {}]   ;;  %s1088_s5 = inlined_call_operand.vmem [shape: f32[2,17,4], index: 5, kind: output, shape index: {0}]   ;;  %s1089_s6 = inlined_call_operand.vmem [shape: f32[2,17,4], index: 6, kind: output, shape index: {1}]  }
   0x1   :  { %s897_s23 = smov 0  }
   0x2 LB: > { %s29_s24 = sadd.s32 1, %s851_s22  ;;  %p779_p0 = scmp.ge.s32.totalorder %s855_s23, 1  ;;  %s855_s23 = sphi %s897_s23, %s17_s23   ;;  %s851_s22 = sphi %s895_s22, %s1091_s22   ;;  %s847_s21 = sphi %s893_s21, %s1090_s21  }
   0x3   : > { %p31_p1 = scmp.ge.s32.totalorder %s29_s24, 2  ;;  %p255_p2 = scmp.lt.s32.totalorder %s855_s23, 3 }
   0x5   : > { %s1093_s24 = smov (%p31_p1, %s29_s24), 0  ;;  %p256_p3 = pnand %p779_p0, %p255_p2 }
   0x6   : > { %p312_p4 = scmp.lt.s32.totalorder (!%p256_p3), %s847_s21, 1 }
   0x7   : > { %259 = sbr.rel (%p256_p3) target bundleno = 194 (0xc2), region = 40 }
   0xc   : > { %v857_v0 = vmov 0   ;;  %s1095_s21 = smov (!%p312_p4, %s847_s21), 1  ;;  %v402_v7 = vlaneseq  ;;  %v784_v11 = vld [vmem:[%s1085_s2] ss:$0 sm:$0xff]  ;;  %vm597_vm0 = vcmask 31744   ;;  %vm600_vm1 = vcmask 24576  }
   0xd   : > { %832 = vset.pattern.permute.xlu1 %v857_v0  ;;  %831 = vset.pattern.permute.xlu0 %v857_v0  ;;  %s911_s25 = smul.u32 24, %s1095_s21  ;;  %v400_v12 = vld [vmem:[%s1086_s3] sm:$0x3f] }
   0xe   : > { %v921_v8 = vshrl.u32 %v402_v7, 7  ;;  %v936_v18 = vld [vmem:[%s1087_s4] sm:$0x3f] }
   0xf   : > { %s319_s28 = scalar_lea.vmem %s1083_s0, %s911_s25  ;;  %s329_s7 = scalar_lea.vmem %s1084_s1, %s911_s25 }
  0x10   : > { %v354_v1 = vld [vmem:[%s319_s28 + $0x10] sm:$0x1]  ;;  %v352_v2 = vld [vmem:[%s319_s28] sm:$0xff]  ;;  %v353_v4 = vld [vmem:[%s319_s28 + $0x8] sm:$0xff]  ;;  %v404_v9 = vsub.s32 0, %v921_v8  ;;  %v411_v10 = vsub.s32 1, %v921_v8  ;;  %s1037_s16 = scalar_lea.vmem %s1089_s6, %s911_s25  ;;  %s1043_s19 = scalar_lea.vmem %s1088_s5, %s911_s25 }
  0x11   : > { %367 = vperm.xlu1 %832, %v354_v1   ;;  %357 = vperm.xlu0 %831, %v352_v2   ;;  %v379_v3 = vld [vmem:[%s329_s7] sm:$0xff]  ;;  %v381_v5 = vld [vmem:[%s329_s7 + $0x10] sm:$0x1]  ;;  %v380_v6 = vld [vmem:[%s329_s7 + $0x8] sm:$0xff]  ;;  %v468_v21 = vsub.s32 2, %v921_v8  ;;  %v475_v26 = vsub.s32 3, %v921_v8 }
  0x12   : > { %v405_v15 = vrot.slane %v400_v12, %v404_v9  ;;  %v412_v16 = vrot.slane %v400_v12, %v411_v10  ;;  %v422_v24 = vrot.slane %v936_v18, %v404_v9  ;;  %v441_v25 = vrot.slane %v936_v18, %v411_v10 }
  0x13   : > { %v958_v40 = vrot.slane %v400_v12, %v468_v21  ;;  %v960_v41 = vrot.slane %v400_v12, %v475_v26  ;;  %v538_v46 = vsub.s32 4, %v921_v8  ;;  %v968_v53 = vrot.slane %v936_v18, %v468_v21 }
  0x14   : > { %v971_v54 = vrot.slane %v936_v18, %v475_v26  ;;  %v545_v55 = vsub.s32 5, %v921_v8 }
  0x15   : > { %384 = vperm.xlu1 %832, %v379_v3   ;;  %362 = vperm.xlu0 %831, %v353_v4   ;;  %v990_v9 = vrot.slane %v936_v18, %v538_v46 }
  0x16   : > { %v986_v7 = vrot.slane %v400_v12, %v545_v55 }
  0x19   : > { %394 = vperm.xlu1 %832, %v381_v5   ;;  %389 = vperm.xlu0 %831, %v380_v6   ;;  %v984_v6 = vrot.slane %v400_v12, %v538_v46 }
  0x8c   : > { %v368_v13 = vpop.permute.xlu1 %367  ;;  %v358_v14 = vpop.permute.xlu0 %357 }
  0x8d   : > { %v931_v17 = vmul.f32 %v784_v11, %v358_v14  ;;  %v941_v23 = vmul.f32 %v784_v11, %v368_v13 }
  0x8f   : > { %v406_v27 = vmul.f32 %v405_v15, %v931_v17  ;;  %v432_v28 = vmul.f32 %v412_v16, %v931_v17  ;;  %v408_v38 = vmul.f32 %v405_v15, %v941_v23  ;;  %v434_v39 = vmul.f32 %v412_v16, %v941_v23 }
  0x90   : > { %v385_v19 = vpop.permute.xlu1 %384  ;;  %v363_v20 = vpop.permute.xlu0 %362 }
  0x91   : > { %v939_v22 = vmul.f32 %v784_v11, %v385_v19  ;;  %v950_v31 = vmul.f32 %v784_v11, %v363_v20  ;;  %v1002_v19 = vrot.slane %v936_v18, %v545_v55 }
  0x93   : > { %v413_v29 = vmul.f32 %v412_v16, %v939_v22  ;;  %v429_v30 = vmul.f32 %v405_v15, %v939_v22  ;;  %v407_v47 = vmul.f32 %v405_v15, %v950_v31  ;;  %v433_v59 = vmul.f32 %v412_v16, %v950_v31 }
  0x94   : > { %v395_v32 = vpop.permute.xlu1 %394  ;;  %v390_v33 = vpop.permute.xlu0 %389 }
  0x95   : > { %v416_v34 = vsub.f32 %v406_v27, %v413_v29  ;;  %v435_v35 = vadd.f32 %v432_v28, %v429_v30  ;;  %v952_v36 = vmul.f32 %v784_v11, %v395_v32  ;;  %v954_v37 = vmul.f32 %v784_v11, %v390_v33 }
  0x97   : > { %v423_v42 = vadd.f32 %v422_v24, %v416_v34  ;;  %v442_v43 = vadd.f32 %v441_v25, %v435_v35  ;;  %v415_v44 = vmul.f32 %v412_v16, %v952_v36  ;;  %v431_v45 = vmul.f32 %v405_v15, %v952_v36 }
  0x98   : > { %v414_v48 = vmul.f32 %v412_v16, %v954_v37  ;;  %v430_v56 = vmul.f32 %v405_v15, %v954_v37 }
  0x99   : > { %v426_v49 = vmax.f32 %v423_v42, 0.0  ;;  %v445_v50 = vmax.f32 %v442_v43, 0.0  ;;  %v418_v51 = vsub.f32 %v408_v38, %v415_v44  ;;  %v437_v52 = vadd.f32 %v434_v39, %v431_v45 }
  0x9a   : > { %v417_v60 = vsub.f32 %v407_v47, %v414_v48  ;;  %v436_v5 = vadd.f32 %v433_v59, %v430_v56 }
  0x9b   : > { %v470_v57 = vmul.f32 %v958_v40, %v426_v49  ;;  %v477_v58 = vmul.f32 %v960_v41, %v445_v50  ;;  %v493_v61 = vmul.f32 %v958_v40, %v445_v50  ;;  %v496_v62 = vmul.f32 %v960_v41, %v426_v49 }
  0x9c   : > { %v425_v63 = vadd.f32 %v422_v24, %v418_v51  ;;  %v444_v0 = vadd.f32 %v441_v25, %v437_v52  ;;  %v424_v13 = vadd.f32 %v422_v24, %v417_v60  ;;  %v785_v20 = vclamps-f32 %v426_v49, 0.01 }
  0x9d   : > { %v480_v1 = vsub.f32 %v470_v57, %v477_v58  ;;  %v499_v2 = vadd.f32 %v496_v62, %v493_v61  ;;  %v443_v26 = vadd.f32 %v441_v25, %v436_v5  ;;  %v788_v30 = vclamps-f32 %v445_v50, 0.01 }
  0x9e   : > { %v980_v3 = vmax.f32 %v425_v63, 0.0  ;;  %v982_v4 = vmax.f32 %v444_v0, 0.0  ;;  %v1009_v38 = vmax.f32 %v424_v13, 0.0  ;;  %v454_v43 = vsub.f32 %v426_v49, %v785_v20 }
  0x9f   : > { %v487_v8 = vadd.f32 %v968_v53, %v480_v1  ;;  %v506_v10 = vadd.f32 %v971_v54, %v499_v2  ;;  %v1012_v46 = vmax.f32 %v443_v26, 0.0  ;;  %v463_v47 = vsub.f32 %v445_v50, %v788_v30 }
  0xa0   : > { %v472_v11 = vmul.f32 %v958_v40, %v980_v3  ;;  %v479_v15 = vmul.f32 %v960_v41, %v982_v4  ;;  %v495_v16 = vmul.f32 %v958_v40, %v982_v4  ;;  %v498_v12 = vmul.f32 %v960_v41, %v980_v3 }
  0xa1   : > { %v490_v14 = vmax.f32 %v487_v8, 0.0  ;;  %v509_v21 = vmax.f32 %v506_v10, 0.0  ;;  %v787_v55 = vclamps-f32 %v980_v3, 0.01  ;;  %v471_v49 = vmul.f32 %v958_v40, %v1009_v38 }
  0xa2   : > { %v482_v29 = vsub.f32 %v472_v11, %v479_v15  ;;  %v501_v34 = vadd.f32 %v498_v12, %v495_v16  ;;  %v478_v63 = vmul.f32 %v960_v41, %v1012_v46  ;;  %v494_v0 = vmul.f32 %v958_v40, %v1012_v46 }
  0xa3   : > { %v791_v27 = vclamps-f32 %v490_v14, 0.01  ;;  %v540_v28 = vmul.f32 %v984_v6, %v490_v14  ;;  %v566_v24 = vmul.f32 %v986_v7, %v490_v14  ;;  %v547_v32 = vmul.f32 %v986_v7, %v509_v21 }
  0xa4   : > { %v563_v33 = vmul.f32 %v984_v6, %v509_v21  ;;  %v489_v35 = vadd.f32 %v968_v53, %v482_v29  ;;  %v794_v18 = vclamps-f32 %v509_v21, 0.01  ;;  %v508_v25 = vadd.f32 %v971_v54, %v501_v34 }
  0xa5   : > { %v550_v39 = vsub.f32 %v540_v28, %v547_v32  ;;  %v518_v44 = vsub.f32 %v490_v14, %v791_v27  ;;  %v481_v13 = vsub.f32 %v471_v49, %v478_v63  ;;  %v497_v14 = vmul.f32 %v960_v41, %v1009_v38 }
  0xa6   : > { %v569_v42 = vadd.f32 %v566_v24, %v563_v33  ;;  %v492_v45 = vmax.f32 %v489_v35, 0.0  ;;  %v511_v52 = vmax.f32 %v508_v25, 0.0  ;;  %v530_v58 = vsub.f32 %v509_v21, %v794_v18 }
  0xa7   : > { %v557_v48 = vadd.f32 %v990_v9, %v550_v39  ;;  %v521_v61 = vadd.f32 %v518_v44, %v454_v43  ;;  %v790_v21 = vclamps-f32 %v982_v4, 0.01  ;;  %v488_v26 = vadd.f32 %v968_v53, %v481_v13 }
  0xa8   : > { %v576_v51 = vadd.f32 %v1002_v19, %v569_v42  ;;  %v542_v56 = vmul.f32 %v984_v6, %v492_v45  ;;  %v568_v57 = vmul.f32 %v986_v7, %v492_v45  ;;  %v549_v50 = vmul.f32 %v986_v7, %v511_v52 }
  0xa9   : > { %v560_v59 = vmax.f32 %v557_v48, 0.0  ;;  %v565_v62 = vmul.f32 %v984_v6, %v511_v52  ;;  %v793_v5 = vclamps-f32 %v492_v45, 0.01  ;;  %v796_v10 = vclamps-f32 %v511_v52, 0.01 }
  0xaa   : > { %v579_v60 = vmax.f32 %v576_v51, 0.0  ;;  %v552_v8 = vsub.f32 %v542_v56, %v549_v50  ;;  %v533_v15 = vadd.f32 %v530_v58, %v463_v47  ;;  %v500_v27 = vadd.f32 %v497_v14, %v494_v0 }
  0xab   : > { %v797_v1 = vclamps-f32 %v560_v59, 0.01  ;;  %v571_v11 = vadd.f32 %v568_v57, %v565_v62  ;;  %v520_v29 = vsub.f32 %v492_v45, %v793_v5  ;;  %v532_v41 = vsub.f32 %v511_v52, %v796_v10 }
  0xac   : > { %v800_v2 = vclamps-f32 %v579_v60, 0.01  ;;  %v559_v20 = vadd.f32 %v990_v9, %v552_v8  ;;  %v491_v53 = vmax.f32 %v488_v26, 0.0  ;;  %v507_v33 = vadd.f32 %v971_v54, %v500_v27 }
  0xad   : > { %v588_v16 = vsub.f32 %v560_v59, %v797_v1  ;;  %v578_v40 = vadd.f32 %v1002_v19, %v571_v11  ;;  %v456_v35 = vsub.f32 %v980_v3, %v787_v55  ;;  %v465_v42 = vsub.f32 %v982_v4, %v790_v21 }
  0xae   : > { %v608_v12 = vsub.f32 %v579_v60, %v800_v2  ;;  %v562_v30 = vmax.f32 %v559_v20, 0.0  ;;  %v510_v43 = vmax.f32 %v507_v33, 0.0  ;;  %v541_v44 = vmul.f32 %v984_v6, %v491_v53 }
  0xaf   : > { %v591_v28 = vadd.f32 %v588_v16, %v521_v61  ;;  %v581_v32 = vmax.f32 %v578_v40, 0.0  ;;  %v523_v45 = vadd.f32 %v520_v29, %v456_v35  ;;  %v567_v54 = vmul.f32 %v986_v7, %v491_v53 }
  0xb0   : > { %v611_v24 = vadd.f32 %v608_v12, %v533_v15  ;;  %v799_v18 = vclamps-f32 %v562_v30, 0.01  ;;  %v548_v48 = vmul.f32 %v986_v7, %v510_v43  ;;  %v564_v4 = vmul.f32 %v984_v6, %v510_v43 }
  0xb1   : > { %v594_v39 = vadd.f32 %v591_v28, %v931_v17  ;;  %v802_v25 = vclamps-f32 %v581_v32, 0.01  ;;  %v792_v52 = vclamps-f32 %v491_v53, 0.01  ;;  %v795_v57 = vclamps-f32 %v510_v43, 0.01 }
  0xb2   : > { %v614_v34 = vadd.f32 %v611_v24, %v939_v22  ;;  %v590_v47 = vsub.f32 %v562_v30, %v799_v18  ;;  %v535_v22 = vadd.f32 %v532_v41, %v465_v42  ;;  %v551_v55 = vsub.f32 %v541_v44, %v548_v48 }
  0xb3   : > { %598 = vst.msk [vmem:[%s1043_s19] sm:$0xff] %vm597_vm0, %v594_v39  ;;  %v610_v3 = vsub.f32 %v581_v32, %v802_v25  ;;  %v570_v49 = vadd.f32 %v567_v54, %v564_v4  ;;  %v786_v59 = vclamps-f32 %v1009_v38, 0.01  ;;  %v789_v7 = vclamps-f32 %v1012_v46, 0.01 }
  0xb4   : > { %617 = vst.msk [vmem:[%s1037_s16] sm:$0xff] %vm597_vm0, %v614_v34  ;;  %v593_v17 = vadd.f32 %v590_v47, %v523_v45  ;;  %v558_v60 = vadd.f32 %v990_v9, %v551_v55  ;;  %v519_v6 = vsub.f32 %v491_v53, %v792_v52  ;;  %v531_v62 = vsub.f32 %v510_v43, %v795_v57 }
  0xb5   : > { %v613_v51 = vadd.f32 %v610_v3, %v535_v22  ;;  %v577_v50 = vadd.f32 %v1002_v19, %v570_v49  ;;  %v455_v63 = vsub.f32 %v1009_v38, %v786_v59 }
  0xb6   : > { %v596_v56 = vadd.f32 %v593_v17, %v941_v23  ;;  %v561_v61 = vmax.f32 %v558_v60, 0.0 }
  0xb7   : > { %v616_v58 = vadd.f32 %v613_v51, %v952_v36  ;;  %v580_v23 = vmax.f32 %v577_v50, 0.0  ;;  %v464_v36 = vsub.f32 %v1012_v46, %v789_v7  ;;  %v522_v2 = vadd.f32 %v519_v6, %v455_v63 }
  0xb8   : > { %601 = vst.msk [vmem:[%s1043_s19 + $0x10] sm:$0x1] %vm600_vm1, %v596_v56  ;;  %v798_v0 = vclamps-f32 %v561_v61, 0.01 }
  0xb9   : > { %619 = vst.msk [vmem:[%s1037_s16 + $0x10] sm:$0x1] %vm600_vm1, %v616_v58  ;;  %v801_v1 = vclamps-f32 %v580_v23, 0.01  ;;  %v534_v5 = vadd.f32 %v531_v62, %v464_v36 }
  0xba   : > { %v589_v9 = vsub.f32 %v561_v61, %v798_v0 }
  0xbb   : > { %v609_v8 = vsub.f32 %v580_v23, %v801_v1 }
  0xbc   : > { %v592_v10 = vadd.f32 %v589_v9, %v522_v2 }
  0xbd   : > { %v612_v11 = vadd.f32 %v609_v8, %v534_v5 }
  0xbe   : > { %v595_v19 = vadd.f32 %v592_v10, %v950_v31 }
  0xbf   : > { %v615_v13 = vadd.f32 %v612_v11, %v954_v37 }
  0xc0   : > { %599 = vst.msk [vmem:[%s1043_s19 + $0x8] sm:$0xff] %vm597_vm0, %v595_v19 }
  0xc1   : > { %618 = vst.msk [vmem:[%s1037_s16 + $0x8] sm:$0xff] %vm597_vm0, %v615_v13 }
  0xc2 PF: > { %s17_s23 = sadd.s32 1, %s855_s23   ;;  %s1090_s21 = smov %s851_s22 }
  0xc3   : > { %p14_p5 = scmp.ge.s32.totalorder %s17_s23, 4   ;;  %s1091_s22 = smov %s1093_s24 }
  0xc5   :  { %16 = sbr.rel (!%p14_p5) target bundleno = 2 (0x2), region = 85 }

// kernel: fgn_forward.3
= control target key start
LH: loop header
LB: loop body
LE: loop exit
PB: predicated region body
PF: predicated region fallthrough
CT: control target
= control target key end

     0   :  { %s1685_s0 = inlined_call_operand.vmem [shape: bf16[2,4,32], index: 0, kind: input, shape index: {}]   ;;  %s1686_s1 = inlined_call_operand.vmem [shape: bf16[32,128], index: 1, kind: input, shape index: {}]   ;;  %s1687_s2 = inlined_call_operand.vmem [shape: f32[1,128], index: 2, kind: input, shape index: {}]   ;;  %s1688_s3 = inlined_call_operand.vmem [shape: bf16[128,128], index: 3, kind: input, shape index: {}]   ;;  %s1689_s4 = inlined_call_operand.vmem [shape: f32[1,128], index: 4, kind: input, shape index: {}]   ;;  %s1690_s5 = inlined_call_operand.vmem [shape: bf16[128,128], index: 5, kind: input, shape index: {}]   ;;  %s1691_s6 = inlined_call_operand.vmem [shape: f32[1,128], index: 6, kind: input, shape index: {}]   ;;  %s1692_s7 = inlined_call_operand.vmem [shape: bf16[128,128], index: 7, kind: input, shape index: {}]   ;;  %s1693_s8 = inlined_call_operand.vmem [shape: f32[1,128], index: 8, kind: input, shape index: {}]   ;;  %s1694_s9 = inlined_call_operand.vmem [shape: f32[1,128], index: 9, kind: input, shape index: {}]   ;;  %s1695_s10 = inlined_call_operand.vmem [shape: bf16[128,128], index: 10, kind: input, shape index: {}]   ;;  %s1696_s11 = inlined_call_operand.vmem [shape: f32[1,128], index: 11, kind: input, shape index: {}]   ;;  %s1697_s12 = inlined_call_operand.hbm [shape: f32[2,1,128], index: 12, kind: output, shape index: {}]  }
   0x1   :  { %1698 = sst [smem:[#allocation5_spill]] %s1685_s0 }
   0x2   :  { %1699 = sst [smem:[#allocation6_spill]] %s1686_s1 }
   0x3   :  { %17 = vsyncpa [#allocation3], 0 }
   0x4   :  { %19 = vsyncpa [#allocation3 + $0x1], 0  ;;  %s1418_s21 = smov 0   ;;  %s1420_s22 = smov 0  }
   0x5   :  { %s1422_s23 = smov 0   ;;  %s1424_s24 = smov 0  }
   0x6 LB: > { %s1439_s25 = sadd.s32 4294967295, %s1348_s24   ;;  %s1032_s26 = sadd.s32 4294967294, %s1348_s24   ;;  %s1348_s24 = sphi %s1424_s24, %s1707_s24   ;;  %s1344_s23 = sphi %s1422_s23, %s1706_s23   ;;  %s1340_s22 = sphi %s1420_s22, %s1705_s22   ;;  %s1336_s21 = sphi %s1418_s21, %s1704_s21  }
   0x7   : > { %s1443_s27 = sadd.s32 1, %s1348_s24   ;;  %s289_s28 = sadd.s32 1, %s1344_s23 }
   0x8   : > { %s286_s29 = ssub.s32 %s1348_s24, %s1443_s27  ;;  %p299_p0 = scmp.ne.s32.totalorder %s1344_s23, %s1340_s22 }
   0x9   : > { %p287_p1 = scmp.eq.s32.totalorder %s286_s29, 0  ;;  %p300_p2 = scmp.eq.s32.totalorder %s1439_s25, 1 }
   0xa   : > { %p305_p3 = scmp.ne.s32.totalorder %s1340_s22, %s1336_s21  ;;  %p306_p4 = scmp.eq.s32.totalorder %s1032_s26, 1 }
   0xb   : > { %s1454_s30 = scalar_select %p287_p1, %s1344_s23, %s289_s28  }
   0xc   : > { %p1456_p5 = por %p300_p2, %p299_p0  ;;  %p1460_p6 = por %p306_p4, %p305_p3 }
   0xd   : > { %p1035_p7 = scmp.ge.s32.totalorder %s1348_s24, 1  ;;  %p364_p8 = scmp.lt.s32.totalorder %s1348_s24, 3 }
   0xf   : > { %p365_p9 = pnand %p1035_p7, %p364_p8 }
  0x10   : > { %s1702_s1 = sld [smem:[#allocation6_spill]] (!%p365_p9)  ;;  %p404_p10 = scmp.lt.s32.totalorder (!%p365_p9), %s1439_s25, 1 }
  0x11   : > { %368 = sbr.rel (%p365_p9) target bundleno = 1266 (0x4f2), region = 68  ;;  %s1703_s0 = sld [smem:[#allocation5_spill]] (!%p365_p9) }
  0x12   : > { %s402_s17 = sand.u32 (!%p365_p9), 1, %s1340_s22   ;;  %s1077_s20 = sshll.u32 (!%p365_p9), %s1439_s25, 4 }
  0x13   : > { %s1644_s16 = scalar_lea.hbm (!%p365_p9), %s1697_s12, %s1077_s20 }
  0x16   : > { %v1248_v0 = vld [vmem:[%s1702_s1 + $0x8] sm:$0xff]   ;;  %v1350_v1 = vmov 0.0   ;;  %v1249_v2 = vld [vmem:[%s1702_s1] sm:$0xff]   ;;  %vm1351_vm0 = vmmov 0   ;;  %v1250_v3 = vld [vmem:[%s1688_s3 + $0x38] sm:$0xff]   ;;  %s405_s26 = scalar_select %p404_p10, %s1439_s25, 1 }
  0x17   : > { %1119 = vmatprep.subr.bf16.mxu0 %v1350_v1  ;;  %1127 = vmatprep.subr.bf16.mxu1 %v1350_v1  ;;  %v1251_v4 = vld [vmem:[%s1688_s3 + $0x30] sm:$0xff]   ;;  %vm433_vm1 = vcmask 261120   ;;  %v1252_v6 = vld [vmem:[%s1688_s3 + $0x28] sm:$0xff]   ;;  %v1253_v7 = vld [vmem:[%s1688_s3 + $0x20] sm:$0xff]   ;;  %vm826_vm2 = vcmask 1043456   ;;  %s1352_s25 = smov [#allocation2]  }
  0x18   : > { %1120 = vmatpush3.bf16.msra.mxu0 %v1248_v0  ;;  %1123 = vmatprep.mubr.msk.bf16.mxu0 %vm1351_vm0, %v1350_v1  ;;  %s1036_s15 = sshll.u32 %s405_s26, 1  ;;  %v1254_v8 = vld [vmem:[%s1688_s3 + $0x18] sm:$0xff]   ;;  %v1255_v9 = vld [vmem:[%s1688_s3 + $0x10] sm:$0xff]   ;;  %v1256_v10 = vld [vmem:[%s1688_s3 + $0x8] sm:$0xff]   ;;  %s403_s26 = scalar_lea.vmem [#allocation2], %s402_s17 }
  0x19   : > { %1121 = vmatprep.subr.bf16.mxu0 %v1350_v1  ;;  %1143 = vmatprep.mubr.msk.bf16.mxu1 %vm1351_vm0, %v1350_v1  ;;  %s407_s18 = scalar_lea.vmem %s1703_s0, %s1036_s15  ;;  %v1257_v11 = vld [vmem:[%s1688_s3] sm:$0xff]   ;;  %v1258_v12 = vld [vmem:[%s1690_s5 + $0x38] sm:$0xff]   ;;  %v1259_v13 = vld [vmem:[%s1690_s5 + $0x30] sm:$0xff]   ;;  %s977_s28 = sshll.u32 %s403_s26, 4  ;;  %s1646_s28 = int_to_ptr.vmem [resolvable:$true] %s977_s28 }
  0x1a   : > { %1128 = vmatpush3.bf16.msra.mxu1 %v1250_v3  ;;  %v409_v5 = vld [vmem:[%s407_s18] sm:$0x3]  ;;  %v1260_v14 = vld [vmem:[%s1690_s5 + $0x28] sm:$0xff]   ;;  %v1262_v16 = vld [vmem:[%s1690_s5 + $0x18] sm:$0xff]   ;;  %s965_s18 = scalar_lea.sflag [#allocation3], %s402_s17  ;;  %s1288_s19 = scalar_lea.vmem %s1646_s28, 16 }
  0x1b   : > { %1129 = vmatprep.subr.bf16.mxu1 %v1350_v1  ;;  %v1261_v15 = vld [vmem:[%s1690_s5 + $0x20] sm:$0xff]   ;;  %v1263_v17 = vld [vmem:[%s1690_s5 + $0x10] sm:$0xff]   ;;  %v1264_v27 = vld [vmem:[%s1690_s5 + $0x8] sm:$0xff]   ;;  %p1289_p11 = scmp.ne.s32.totalorder %s1646_s28, %s1288_s19  ;;  %s1292_s0 = sshll.u32 %s1352_s25, 4  ;;  %s1293_s0 = int_to_ptr.vmem [resolvable:$false] %s1292_s0 }
  0x1c   : > { %1122 = vmatpush3.bf16.msra.mxu0 %v1249_v2  ;;  %v1037_v18 = vld [vmem:[%s1687_s2] ss:$0 sm:$0xff]  ;;  %v1266_v29 = vld [vmem:[%s1692_s7 + $0x38] sm:$0xff]   ;;  %v1267_v30 = vld [vmem:[%s1692_s7 + $0x30] sm:$0xff]   ;;  %s1294_s29 = scalar_lea.vmem %s1293_s0, 32  ;;  %p1295_p0 = scmp.lt.s32.totalorder %s1646_s28, %s1293_s0 }
  0x1d   : > { %1147 = vmatprep.subr.bf16.mxu0 %v1350_v1  ;;  %v1265_v28 = vld [vmem:[%s1690_s5] sm:$0xff]   ;;  %v1268_v31 = vld [vmem:[%s1692_s7 + $0x28] sm:$0xff]   ;;  %v1270_v33 = vld [vmem:[%s1692_s7 + $0x18] sm:$0xff]   ;;  %p1290_p12 = pnand %p1289_p11, %p1456_p5  ;;  %p1296_p1 = scmp.lt.s32.totalorder %s1294_s29, %s1288_s19 }
  0x1e   : > { %1130 = vmatpush3.bf16.msra.mxu1 %v1251_v4  ;;  %v1269_v32 = vld [vmem:[%s1692_s7 + $0x20] sm:$0xff]   ;;  %v1271_v34 = vld [vmem:[%s1692_s7 + $0x10] sm:$0xff]   ;;  %v1272_v35 = vld [vmem:[%s1692_s7 + $0x8] sm:$0xff]  }
  0x1f   : > { %1124 = vmatmul.mubr.msk.bf16.vlgmr.msra.gmra.mxu0 %vm433_vm1, %v409_v5  ;;  %1131 = vmatprep.subr.bf16.mxu1 %v1350_v1  ;;  %v1041_v36 = vld [vmem:[%s1689_s4] ss:$0 sm:$0xff]  ;;  %v1274_v63 = vld [vmem:[%s1695_s10 + $0x38] sm:$0xff]   ;;  %v1275_v0 = vld [vmem:[%s1695_s10 + $0x30] sm:$0xff]   ;;  %p1291_p13 = pneg %p1290_p12  ;;  %p1297_p2 = por %p1296_p1, %p1295_p0 }
  0x20   : > { %1163 = vmatprep.mubr.msk.bf16.mxu0 %vm1351_vm0, %v1350_v1  ;;  %1148 = vmatpush3.bf16.msra.mxu0 %v1258_v12  ;;  %v1273_v45 = vld [vmem:[%s1692_s7] sm:$0xff]   ;;  %v1276_v2 = vld [vmem:[%s1695_s10 + $0x28] sm:$0xff]   ;;  %v1278_v4 = vld [vmem:[%s1695_s10 + $0x18] sm:$0xff]  }
  0x21   : > { %1149 = vmatprep.subr.bf16.mxu0 %v1350_v1  ;;  %v1050_v46 = vld [vmem:[%s1691_s6] ss:$0 sm:$0xff]  ;;  %v1279_v5 = vld [vmem:[%s1695_s10 + $0x10] sm:$0xff]   ;;  %p1298_p3 = pnand %p1297_p2, %p1291_p13 }
  0x22   : > { %1132 = vmatpush3.bf16.msra.mxu1 %v1252_v6  ;;  %v1059_v53 = vld [vmem:[%s1693_s8] ss:$0 sm:$0xff]  ;;  %v1280_v6 = vld [vmem:[%s1695_s10 + $0x8] sm:$0xff]  }
  0x23   : > { %1133 = vmatprep.subr.bf16.mxu1 %v1350_v1  ;;  %v1068_v59 = vld [vmem:[%s1694_s9] ss:$0 sm:$0xff] }
  0x24   : > { %1150 = vmatpush3.bf16.msra.mxu0 %v1259_v13  ;;  %v1277_v3 = vld [vmem:[%s1695_s10 + $0x20] sm:$0xff]  }
  0x25   : > { %1151 = vmatprep.subr.bf16.mxu0 %v1350_v1 }
  0x26   : > { %1134 = vmatpush3.bf16.msra.mxu1 %v1253_v7  ;;  %v1281_v7 = vld [vmem:[%s1695_s10] sm:$0xff]  }
  0x27   : > { %1135 = vmatprep.subr.bf16.mxu1 %v1350_v1 }
  0x28   : > { %1152 = vmatpush3.bf16.msra.mxu0 %v1260_v14 }
  0x29   : > { %1153 = vmatprep.subr.bf16.mxu0 %v1350_v1 }
  0x2a   : > { %1136 = vmatpush3.bf16.msra.mxu1 %v1254_v8 }
  0x2b   : > { %1137 = vmatprep.subr.bf16.mxu1 %v1350_v1 }
  0x2c   : > { %1154 = vmatpush3.bf16.msra.mxu0 %v1261_v15 }
  0x2d   : > { %1155 = vmatprep.subr.bf16.mxu0 %v1350_v1 }
  0x2e   : > { %1138 = vmatpush3.bf16.msra.mxu1 %v1255_v9 }
  0x2f   : > { %1139 = vmatprep.subr.bf16.mxu1 %v1350_v1 }
  0x30   : > { %1156 = vmatpush3.bf16.msra.mxu0 %v1262_v16 }
  0x31   : > { %1157 = vmatprep.subr.bf16.mxu0 %v1350_v1 }
  0x32   : > { %1140 = vmatpush3.bf16.msra.mxu1 %v1256_v10 }
  0x33   : > { %1141 = vmatprep.subr.bf16.mxu1 %v1350_v1 }
  0x34   : > { %1158 = vmatpush3.bf16.msra.mxu0 %v1263_v17 }
  0x35   : > { %1159 = vmatprep.subr.bf16.mxu0 %v1350_v1 }
  0x36   : > { %1142 = vmatpush3.bf16.msra.mxu1 %v1257_v11 }
  0x37   : > { %1167 = vmatprep.subr.bf16.mxu1 %v1350_v1 }
  0x38   : > { %1160 = vmatpush3.bf16.msra.mxu0 %v1264_v27 }
  0x39   : > { %1161 = vmatprep.subr.bf16.mxu0 %v1350_v1 }
  0x3c   : > { %1162 = vmatpush3.bf16.msra.mxu0 %v1265_v28 }
  0x3d   : > { %1187 = vmatprep.subr.bf16.mxu0 %v1350_v1 }
  0xdf   : > { %v471_v19 = vpop.f32.mrf.mxu0 }
  0xe0   : > { %v472_v20 = vadd.f32 %v1037_v18, %v471_v19 }
  0xe1   : > { %v1125_v21 = vpop.f32.mrf.mxu0 }
  0xe2   : > { %v477_v22 = vmul.f32 0.01, %v472_v20 }
  0xe3   : > { %v474_v23 = vpop.f32.mrf.mxu0 }
  0xe4   : > { %v478_v24 = vmax.f32 %v472_v20, %v477_v22 }
  0xe5   : > { %v1126_v25 = vpop.f32.mrf.mxu0 }
  0xe6   : > { %v479_v26 = vpack.c.bf16 %v478_v24, %v478_v24 }
  0xe8   : > { %1144 = vmatmul.mubr.bf16.vlgmr.msra.gmra.mxu1 %v479_v26 }
  0xe9   : > { %1183 = vmatprep.mubr.msk.bf16.mxu1 %vm1351_vm0, %v1350_v1  ;;  %1168 = vmatpush3.bf16.msra.mxu1 %v1266_v29 }
  0xea   : > { %1169 = vmatprep.subr.bf16.mxu1 %v1350_v1 }
  0xed   : > { %1170 = vmatpush3.bf16.msra.mxu1 %v1267_v30 }
  0xee   : > { %1171 = vmatprep.subr.bf16.mxu1 %v1350_v1 }
  0xf1   : > { %1172 = vmatpush3.bf16.msra.mxu1 %v1268_v31 }
  0xf2   : > { %1173 = vmatprep.subr.bf16.mxu1 %v1350_v1 }
  0xf5   : > { %1174 = vmatpush3.bf16.msra.mxu1 %v1269_v32 }
  0xf6   : > { %1175 = vmatprep.subr.bf16.mxu1 %v1350_v1 }
  0xf9   : > { %1176 = vmatpush3.bf16.msra.mxu1 %v1270_v33 }
  0xfa   : > { %1177 = vmatprep.subr.bf16.mxu1 %v1350_v1 }
  0xfd   : > { %1178 = vmatpush3.bf16.msra.mxu1 %v1271_v34 }
  0xfe   : > { %1179 = vmatprep.subr.bf16.mxu1 %v1350_v1 }
 0x101   : > { %1180 = vmatpush3.bf16.msra.mxu1 %v1272_v35 }
 0x102   : > { %1181 = vmatprep.subr.bf16.mxu1 %v1350_v1 }
 0x105   : > { %1182 = vmatpush3.bf16.msra.mxu1 %v1273_v45 }
 0x1a8   : > { %v585_v37 = vpop.f32.mrf.mxu1 }
 0x1a9   : > { %v586_v38 = vadd.f32 %v1041_v36, %v585_v37  ;;  %v874_v36 = vld [vmem:[%s1696_s11] sm:$0x1] }
 0x1aa   : > { %v1145_v39 = vpop.f32.mrf.mxu1 }
 0x1ab   : > { %v591_v40 = vmul.f32 0.01, %v586_v38 }
 0x1ac   : > { %v588_v41 = vpop.f32.mrf.mxu1 }
 0x1ad   : > { %v592_v42 = vmax.f32 %v586_v38, %v591_v40 }
 0x1ae   : > { %v1146_v43 = vpop.f32.mrf.mxu1 }
 0x1af   : > { %v593_v44 = vpack.c.bf16 %v592_v42, %v592_v42 }
 0x1b1   : > { %1164 = vmatmul.mubr.bf16.vlgmr.msra.gmra.mxu0 %v593_v44 }
 0x1b2   : > { %1203 = vmatprep.mubr.msk.bf16.mxu0 %vm1351_vm0, %v1350_v1  ;;  %1188 = vmatpush3.bf16.msra.mxu0 %v1274_v63 }
 0x1b3   : > { %1189 = vmatprep.subr.bf16.mxu0 %v1350_v1 }
 0x1b6   : > { %1190 = vmatpush3.bf16.msra.mxu0 %v1275_v0 }
 0x1b7   : > { %1191 = vmatprep.subr.bf16.mxu0 %v1350_v1 }
 0x1ba   : > { %1192 = vmatpush3.bf16.msra.mxu0 %v1276_v2 }
 0x1bb   : > { %1193 = vmatprep.subr.bf16.mxu0 %v1350_v1 }
 0x1be   : > { %1194 = vmatpush3.bf16.msra.mxu0 %v1277_v3 }
 0x1bf   : > { %1195 = vmatprep.subr.bf16.mxu0 %v1350_v1 }
 0x1c2   : > { %1196 = vmatpush3.bf16.msra.mxu0 %v1278_v4 }
 0x1c3   : > { %1197 = vmatprep.subr.bf16.mxu0 %v1350_v1 }
 0x1c6   : > { %1198 = vmatpush3.bf16.msra.mxu0 %v1279_v5 }
 0x1c7   : > { %1199 = vmatprep.subr.bf16.mxu0 %v1350_v1 }
 0x1ca   : > { %1200 = vmatpush3.bf16.msra.mxu0 %v1280_v6 }
 0x1cb   : > { %1201 = vmatprep.subr.bf16.mxu0 %v1350_v1 }
 0x1ce   : > { %1202 = vmatpush3.bf16.msra.mxu0 %v1281_v7 }
 0x271   : > { %v699_v47 = vpop.f32.mrf.mxu0 }
 0x272   : > { %v700_v48 = vadd.f32 %v1050_v46, %v699_v47 }
 0x273   : > { %v1165_v49 = vpop.f32.mrf.mxu0 }
 0x274   : > { %v705_v50 = vpack.c.bf16 %v700_v48, %v700_v48 }
 0x275   : > { %v702_v51 = vpop.f32.mrf.mxu0 }
 0x276   : > { %1184 = vmatmul.mubr.bf16.vlgmr.msra.gmra.mxu1 %v705_v50 }
 0x277   : > { %v1166_v52 = vpop.f32.mrf.mxu0 }
 0x336   : > { %v811_v54 = vpop.f32.mrf.mxu1 }
 0x337   : > { %v812_v55 = vadd.f32 %v1059_v53, %v811_v54 }
 0x338   : > { %v1185_v56 = vpop.f32.mrf.mxu1 }
 0x339   : > { %1282 = vtanh.f32 %v812_v55 }
 0x33a   : > { %v814_v57 = vpop.f32.mrf.mxu1 }
 0x33c   : > { %v1186_v58 = vpop.f32.mrf.mxu1 }
 0x346   : > { %v1283_v60 = vpop.eup %1282 }
 0x347   : > { %v825_v61 = vmul.f32 %v1283_v60, %v1068_v59 }
 0x349   : > { %v827_v62 = vsel %vm826_vm2, %v825_v61, 0.0 }
 0x34a   : > { %828 = vadd.xlane.f32.xlu0 %v827_v62 }
 0x3d3   : > { %v829_v8 = vpop.xlane.xlu0 %828 }
 0x3d4   : > { %v830_v9 = vsel %vm826_vm2, %v829_v8, -inf }
 0x3d5   : > { %v831_v10 = vrot.slane %v830_v9, 4 }
 0x3d7   : > { %v832_v11 = vmax.f32 %v830_v9, %v831_v10 }
 0x3d9   : > { %v833_v12 = vrot.slane %v832_v11, 2 }
 0x3db   : > { %v834_v13 = vmax.f32 %v832_v11, %v833_v12 }
 0x3dd   : > { %v835_v14 = vrot.slane %v834_v13, 1 }
 0x3df   : > { %v836_v15 = vmax.f32 %v834_v13, %v835_v14 }
 0x3e1   : > { %v837_v16 = vsub.f32 %v829_v8, %v836_v15 }
 0x3e3   : > { %v838_v17 = vmul.f32 1.442695, %v837_v16 }
 0x3e5   : > { %1284 = vpow2.f32 %v838_v17 }
 0x3f2   : > { %v1285_v18 = vpop.eup %1284 }
 0x3f3   : > { %v840_v19 = vsel %vm826_vm2, %v1285_v18, 0.0 }
 0x3f4   : > { %v841_v20 = vrot.slane %v840_v19, 4 }
 0x3f6   : > { %v842_v21 = vadd.f32 %v841_v20, %v840_v19 }
 0x3f8   : > { %v843_v22 = vrot.slane %v842_v21, 2 }
 0x3fa   : > { %v844_v1 = vadd.f32 %v843_v22, %v842_v21 }
 0x3fc   : > { %v845_v23 = vrot.slane %v844_v1, 1 }
 0x3fe   : > { %v846_v24 = vadd.f32 %v845_v23, %v844_v1 }
 0x400   : > { %1286 = vrcp.f32 %v846_v24 }
 0x40d   : > { %v1287_v25 = vpop.eup %1286 }
 0x40e   : > { %v848_v26 = vmul.f32 %v1287_v25, %v1285_v18 }
 0x410   : > { %v849_v27 = vmul.f32 %v1283_v60, %v848_v26 }
 0x412   : > { %v850_v28 = vsel %vm826_vm2, %v849_v27, 0.0 }
 0x413   : > { %v851_v29 = vrot.slane %v850_v28, 4 }
 0x415   : > { %v852_v30 = vadd.f32 %v851_v29, %v850_v28 }
 0x417   : > { %v853_v31 = vrot.slane %v852_v30, 2 }
 0x419   : > { %v854_v32 = vadd.f32 %v853_v31, %v852_v30 }
 0x41b   : > { %v855_v33 = vrot.slane %v854_v32, 1 }
 0x41d   : > { %v856_v34 = vadd.f32 %v855_v33, %v854_v32 }
 0x41f   : > { %v857_v35 = vpack.c.bf16 %v856_v34, %v856_v34 }
 0x421   : > { %1204 = vmatmul.mubr.bf16.vlgmr.msra.gmra.mxu0 %v857_v35 }
 0x4e1   : > { %v957_v37 = vpop.f32.mrf.mxu0 }
 0x4e2   : > { %v958_v38 = vadd.f32 %v957_v37, %v874_v36 }
 0x4e3   : > { %v1205_v39 = vpop.f32.mrf.mxu0 }
 0x4e4   : > { %963 = vst [vmem:[%s403_s26] sm:$0x1] %v958_v38 }
 0x4e5   : > { %v960_v40 = vpop.f32.mrf.mxu0 }
 0x4e6   : > { %1301 = shalt.err (!%p1298_p3)
}
 0x4e7   : > { %s1302_s20 = scalar_lea.hbm %s1644_s16, 16  ;;  %s1306_s15 = scalar_lea.hbm %s1697_s12, 32 }
 0x4e8   : > { %p1303_p4 = scmp.ne.s32.totalorder %s1644_s16, %s1302_s20  ;;  %p1307_p9 = scmp.lt.s32.totalorder %s1644_s16, %s1697_s12 }
 0x4e9   : > { %p1308_p10 = scmp.lt.s32.totalorder %s1306_s15, %s1302_s20 }
 0x4ea   : > { %p1304_p7 = pnand %p1303_p4, %p1456_p5 }
 0x4eb   : > { %p1309_p11 = por %p1308_p10, %p1307_p9 }
 0x4ec   : > { %p1305_p8 = pneg %p1304_p7 }
 0x4ee   : > { %p1310_p12 = pnand %p1309_p11, %p1305_p8 }
 0x4f0   : > { %1313 = shalt.err (!%p1310_p12)
}
 0x4f1   : > { %1207 = dma.vmem_to_hbm [thread:$0]  (%p1456_p5), %s1646_s28, 16, %s1644_s16, %s965_s18   ;;  %v1206_v41 = vpop.f32.mrf.mxu0 }
 0x4f2 PF: > { %p1213_p13 = scmp.ge.s32.totalorder %s1348_s24, 2  ;;  %s989_s0 = sand.u32 1, %s1336_s21  }
 0x4f3   : > { %s990_s1 = scalar_lea.sflag [#allocation3], %s989_s0 }
 0x4f4   : > { %p1210_p0 = pnand %p1213_p13, %p1460_p6 }
 0x4f6   : > { %p1211_p1 = pneg %p1210_p0 }
 0x4f8   : > { %1331 = dma.done.wait (%p1211_p1), %s990_s1, 16  }
 0x4f9   : > { %1333 = vsyncadd (%p1211_p1), %s990_s1, 4294967280  ;;  %p22_p2 = scmp.ge.s32.totalorder %s1443_s27, 4   ;;  %s1704_s21 = smov %s1340_s22 }
 0x4fa   : > { %s1705_s22 = smov %s1344_s23  ;;  %s1706_s23 = smov %s1454_s30 }
 0x4fb   : > { %s1707_s24 = smov %s1443_s27  ;;  %24 = sbr.rel (!%p22_p2) target bundleno = 6 (0x6), region = 103 }
 0x500   :  { %994 = vsyncpa [#allocation3], 1 }
 0x501   :  { %996 = vsyncpa [#allocation3 + $0x1], 1 }

</bundles_post_ra>
